<compile_context>
chip_gen: v6e
topology: v6e:2x2x1
jax: 0.10.0
libtpu: 0.0.40
codegen_flags: <defaults>
</compile_context>

<pallas_src>
import jax
import jax.numpy as jnp
from jax.experimental import pallas as pl
from jax.experimental.pallas import tpu as pltpu


# ---------------------------------------------------------------------------
# Kernels
# ---------------------------------------------------------------------------

def _ae_recon_kernel(x_ref, w1_ref, b1_ref, w2_ref, b2_ref,
                     w3_ref, b3_ref, w4_ref, b4_ref, recon_ref):
    """Fused fc1->relu->fc2->fc3->relu->fc4->sigmoid for one batch tile.

    Weights are bf16 (MXU-native operands); biases and accumulation stay f32.
    """
    xb = x_ref[...].astype(jnp.bfloat16)

    # ---- encode ----
    h = jnp.dot(xb, w1_ref[...], preferred_element_type=jnp.float32) + b1_ref[...]
    h = jnp.maximum(h, 0.0).astype(jnp.bfloat16)                      # relu(fc1)
    z = jnp.dot(h, w2_ref[...], preferred_element_type=jnp.float32) + b2_ref[...]

    # ---- decode ----
    zb = z.astype(jnp.bfloat16)
    h2 = jnp.dot(zb, w3_ref[...], preferred_element_type=jnp.float32) + b3_ref[...]
    h2 = jnp.maximum(h2, 0.0).astype(jnp.bfloat16)                    # relu(fc3)
    logits = jnp.dot(h2, w4_ref[...], preferred_element_type=jnp.float32) + b4_ref[...]

    # sigmoid: exp on the EUP, divide replaced by EUP approx reciprocal.
    recon = pl.reciprocal(1.0 + jnp.exp(-logits), approx=True)
    recon_ref[...] = recon.astype(recon_ref.dtype)


def _ae_latent_kernel(x_ref, w1_ref, b1_ref, w2_ref, b2_ref, z_ref):
    """Encoder only: z = fc2(relu(fc1(x)))."""
    xb = x_ref[...].astype(jnp.bfloat16)
    h = jnp.dot(xb, w1_ref[...], preferred_element_type=jnp.float32) + b1_ref[...]
    h = jnp.maximum(h, 0.0).astype(jnp.bfloat16)
    z = jnp.dot(h, w2_ref[...], preferred_element_type=jnp.float32) + b2_ref[...]
    z_ref[...] = z.astype(z_ref.dtype)


# ---------------------------------------------------------------------------
# Wrapper helpers
# ---------------------------------------------------------------------------

def _round_up(x, m):
    return ((x + m - 1) // m) * m


def _pick_tile(batch):
    """Batch tile: multiple of 8 (f32 sublane), capped at 512 rows (per-step
    footprint ~13 MiB, well inside the 32 MiB scoped-VMEM default on every
    generation incl. v7x).  For larger batches, aim for >= 2 grid steps so the
    'parallel' batch axis can be split across v7x's two TensorCores."""
    if batch <= 256:
        return _round_up(batch, 8)
    half = _round_up((batch + 1) // 2, 8)
    return max(256, min(512, half))


def _resident(shape):
    """Weight/bias block: full array, constant index_map (DMA'd once and kept
    resident in VMEM) and single-buffered — the pipeliner would otherwise
    allocate two copies of every constant operand."""
    return pl.BlockSpec(shape, lambda i: (0, 0), pipeline_mode=pl.Buffered(1))


def prepare_params(params):
    """One-time parameter prep (call once, outside the hot loop):
      * weights stored (in, out) so the kernel computes y = x @ W + b
        (identical to torch's x @ W.T + b with W of shape (out, in));
      * hidden dim 400 zero-padded to 512 on the *weight* side only, so the
        intermediates h / h2 are lane-dense.  Exact math: padded columns of
        W1/W3 and padded entries of b1/b3 are zero (relu(0)=0), padded rows of
        W2/W4 are zero (no contribution);
      * weights cast to bf16 (MXU operands); biases kept f32."""
    w1, b1, w2, b2, w3, b3, w4, b4 = params
    hid = w1.shape[1]
    ph = _round_up(hid, 128) - hid
    w1p = jnp.pad(w1, ((0, 0), (0, ph))).astype(jnp.bfloat16)
    b1p = jnp.pad(b1, ((0, 0), (0, ph))).astype(jnp.float32)
    w2p = jnp.pad(w2, ((0, ph), (0, 0))).astype(jnp.bfloat16)
    b2p = b2.astype(jnp.float32)
    w3p = jnp.pad(w3, ((0, 0), (0, ph))).astype(jnp.bfloat16)
    b3p = jnp.pad(b3, ((0, 0), (0, ph))).astype(jnp.float32)
    w4p = jnp.pad(w4, ((0, ph), (0, 0))).astype(jnp.bfloat16)
    b4p = b4.astype(jnp.float32)
    return (w1p, b1p, w2p, b2p, w3p, b3p, w4p, b4p)


# ---------------------------------------------------------------------------
# Public entry points (mirror the torch module)
# ---------------------------------------------------------------------------

def ae_forward(x, prepared_params):
    """Mirrors AE.forward: returns (reconstruction, None, None)."""
    w1, b1, w2, b2, w3, b3, w4, b4 = prepared_params
    in_dim, hid = w1.shape
    lat = w2.shape[1]

    x2d = x.reshape(-1, in_dim).astype(jnp.float32)        # x.view(-1, 784)
    batch = x2d.shape[0]
    tb = _pick_tile(batch)
    grid = (pl.cdiv(batch, tb),)   # ragged last block: OOB rows masked by Pallas

    recon = pl.pallas_call(
        _ae_recon_kernel,
        out_shape=jax.ShapeDtypeStruct((batch, in_dim), jnp.float32),
        grid_spec=pltpu.PrefetchScalarGridSpec(
            num_scalar_prefetch=0,
            grid=grid,
            in_specs=[
                pl.BlockSpec((tb, in_dim), lambda i: (i, 0)),   # x tile
                _resident((in_dim, hid)),                       # fc1 W (bf16)
                _resident((1, hid)),                            # fc1 b
                _resident((hid, lat)),                          # fc2 W
                _resident((1, lat)),                            # fc2 b
                _resident((lat, hid)),                          # fc3 W
                _resident((1, hid)),                            # fc3 b
                _resident((hid, in_dim)),                       # fc4 W
                _resident((1, in_dim)),                         # fc4 b
            ],
            out_specs=pl.BlockSpec((tb, in_dim), lambda i: (i, 0)),
        ),
        compiler_params=pltpu.CompilerParams(
            dimension_semantics=("parallel",),
        ),
    )(x2d, w1, b1, w2, b2, w3, b3, w4, b4)
    return recon, None, None


def ae_latent_feature(x, prepared_params):
    """Mirrors AE.latent_feature: returns z (encoder-only kernel)."""
    w1, b1, w2, b2 = prepared_params[:4]
    in_dim, hid = w1.shape
    lat = w2.shape[1]

    x2d = x.reshape(-1, in_dim).astype(jnp.float32)
    batch = x2d.shape[0]
    tb = _pick_tile(batch)
    grid = (pl.cdiv(batch, tb),)

    # Note: z's last dim (config.dim) is < 128 lanes so z stores are masked
    # partial vst; z is tiny so this is negligible for the encoder path.
    z = pl.pallas_call(
        _ae_latent_kernel,
        out_shape=jax.ShapeDtypeStruct((batch, lat), jnp.float32),
        grid_spec=pltpu.PrefetchScalarGridSpec(
            num_scalar_prefetch=0,
            grid=grid,
            in_specs=[
                pl.BlockSpec((tb, in_dim), lambda i: (i, 0)),   # x tile
                _resident((in_dim, hid)),                       # fc1 W
                _resident((1, hid)),                            # fc1 b
                _resident((hid, lat)),                          # fc2 W
                _resident((1, lat)),                            # fc2 b
            ],
            out_specs=pl.BlockSpec((tb, lat), lambda i: (i, 0)),
        ),
        compiler_params=pltpu.CompilerParams(
            dimension_semantics=("parallel",),
        ),
    )(x2d, w1, b1, w2, b2)
    return z


# ---------------------------------------------------------------------------
# Pure-JAX f32 reference (correctness check)
# ---------------------------------------------------------------------------

def _ae_reference(x, raw_params):
    w1, b1, w2, b2, w3, b3, w4, b4 = raw_params
    x2d = x.reshape(-1, w1.shape[0]).astype(jnp.float32)
    h = jax.nn.relu(x2d @ w1 + b1)
    z = h @ w2 + b2
    h2 = jax.nn.relu(z @ w3 + b3)
    recon = jax.nn.sigmoid(h2 @ w4 + b4)
    return recon, z


if __name__ == "__main__":
    key = jax.random.PRNGKey(0)
    latent_dim = 32  # config.dim

    def init_linear(k, fan_in, fan_out):
        # torch.nn.Linear default init: U(-1/sqrt(fan_in), 1/sqrt(fan_in)).
        kw, kb = jax.random.split(k)
        bound = 1.0 / (fan_in ** 0.5)
        w = jax.random.uniform(kw, (fan_in, fan_out), jnp.float32, -bound, bound)
        b = jax.random.uniform(kb, (1, fan_out), jnp.float32, -bound, bound)
        return w, b

    k1, k2, k3, k4, kx = jax.random.split(key, 5)
    w1, b1 = init_linear(k1, 784, 400)
    w2, b2 = init_linear(k2, 400, latent_dim)
    w3, b3 = init_linear(k3, latent_dim, 400)
    w4, b4 = init_linear(k4, 400, 784)
    raw_params = (w1, b1, w2, b2, w3, b3, w4, b4)
    params = prepare_params(raw_params)   # one-time pad-to-512 + bf16 cast

    # Small MNIST-like input: batch=2, 1x28x28 images -> view(-1, 784).
    x = jax.random.uniform(kx, (2, 1, 28, 28), dtype=jnp.float32)

    recon, _, _ = ae_forward(x, params)
    z = ae_latent_feature(x, params)
    jax.block_until_ready((recon, z))

    recon_ref, z_ref = _ae_reference(x, raw_params)
    assert recon.shape == (2, 784) and recon.dtype == jnp.float32
    assert z.shape == (2, latent_dim) and z.dtype == jnp.float32
    # bf16 MXU operands (f32 accumulation) -> relaxed tolerance vs f32 reference.
    assert bool(jnp.allclose(recon, recon_ref, atol=2e-2, rtol=2e-2))
    assert bool(jnp.allclose(z, z_ref, atol=2e-2, rtol=2e-2))

    print("KERNEL_OK")
</pallas_src>

<mosaic_0001>
module attributes {stable_mosaic.version = 11 : i64} {
  func.func @_ae_recon_kernel(%arg0: i32, %arg1: memref<8x784xf32, #tpu.memory_space<vmem>>, %arg2: memref<784x512xbf16, #tpu.memory_space<vmem>>, %arg3: memref<1x512xf32, #tpu.memory_space<vmem>>, %arg4: memref<512x32xbf16, #tpu.memory_space<vmem>>, %arg5: memref<1x32xf32, #tpu.memory_space<vmem>>, %arg6: memref<32x512xbf16, #tpu.memory_space<vmem>>, %arg7: memref<1x512xf32, #tpu.memory_space<vmem>>, %arg8: memref<512x784xbf16, #tpu.memory_space<vmem>>, %arg9: memref<1x784xf32, #tpu.memory_space<vmem>>, %arg10: memref<8x784xf32, #tpu.memory_space<vmem>>) attributes {dimension_semantics = [#tpu.dimension_semantics<parallel>], iteration_bounds = array<i64: 1>, scalar_prefetch = 0 : i64, scratch_operands = 0 : i64, tpu.core_type = #tpu.core_type<tc>, window_params = [{transform_indices = @transform_0, window_bounds = array<i64: 8, 784>}, {pipeline_mode = #tpu.pipeline_mode<synchronous>, transform_indices = @transform_1, window_bounds = array<i64: 784, 512>}, {pipeline_mode = #tpu.pipeline_mode<synchronous>, transform_indices = @transform_2, window_bounds = array<i64: 1, 512>}, {pipeline_mode = #tpu.pipeline_mode<synchronous>, transform_indices = @transform_3, window_bounds = array<i64: 512, 32>}, {pipeline_mode = #tpu.pipeline_mode<synchronous>, transform_indices = @transform_4, window_bounds = array<i64: 1, 32>}, {pipeline_mode = #tpu.pipeline_mode<synchronous>, transform_indices = @transform_5, window_bounds = array<i64: 32, 512>}, {pipeline_mode = #tpu.pipeline_mode<synchronous>, transform_indices = @transform_6, window_bounds = array<i64: 1, 512>}, {pipeline_mode = #tpu.pipeline_mode<synchronous>, transform_indices = @transform_7, window_bounds = array<i64: 512, 784>}, {pipeline_mode = #tpu.pipeline_mode<synchronous>, transform_indices = @transform_8, window_bounds = array<i64: 1, 784>}, {transform_indices = @transform_9, window_bounds = array<i64: 8, 784>}]} {
    %c0 = arith.constant 0 : index
    %c0_0 = arith.constant 0 : index
    %0 = vector.load %arg1[%c0, %c0_0] : memref<8x784xf32, #tpu.memory_space<vmem>>, vector<8x784xf32>
    %1 = arith.truncf %0 : vector<8x784xf32> to vector<8x784xbf16>
    %c0_1 = arith.constant 0 : index
    %c0_2 = arith.constant 0 : index
    %2 = vector.load %arg2[%c0_1, %c0_2] : memref<784x512xbf16, #tpu.memory_space<vmem>>, vector<784x512xbf16>
    %cst = arith.constant dense<0.000000e+00> : vector<8x512xf32>
    %3 = tpu.matmul %1, %2, %cst {dimension_numbers = #tpu.dot_dimension_numbers<[1], [0], [0], [1], [0, 0, 1, 1], [], []>} : vector<8x784xbf16>, vector<784x512xbf16>, vector<8x512xf32> -> vector<8x512xf32>
    %c0_3 = arith.constant 0 : index
    %c0_4 = arith.constant 0 : index
    %4 = vector.load %arg3[%c0_3, %c0_4] : memref<1x512xf32, #tpu.memory_space<vmem>>, vector<1x512xf32>
    %5 = vector.broadcast %4 : vector<1x512xf32> to vector<8x512xf32>
    %6 = arith.addf %3, %5 : vector<8x512xf32>
    %cst_5 = arith.constant 0.000000e+00 : f32
    %7 = vector.broadcast %cst_5 : f32 to vector<8x512xf32>
    %8 = arith.maximumf %6, %7 : vector<8x512xf32>
    %9 = arith.truncf %8 : vector<8x512xf32> to vector<8x512xbf16>
    %c0_6 = arith.constant 0 : index
    %c0_7 = arith.constant 0 : index
    %10 = vector.load %arg4[%c0_6, %c0_7] : memref<512x32xbf16, #tpu.memory_space<vmem>>, vector<512x32xbf16>
    %cst_8 = arith.constant dense<0.000000e+00> : vector<8x32xf32>
    %11 = tpu.matmul %9, %10, %cst_8 {dimension_numbers = #tpu.dot_dimension_numbers<[1], [0], [0], [1], [0, 0, 1, 1], [], []>} : vector<8x512xbf16>, vector<512x32xbf16>, vector<8x32xf32> -> vector<8x32xf32>
    %c0_9 = arith.constant 0 : index
    %c0_10 = arith.constant 0 : index
    %12 = vector.load %arg5[%c0_9, %c0_10] : memref<1x32xf32, #tpu.memory_space<vmem>>, vector<1x32xf32>
    %13 = vector.broadcast %12 : vector<1x32xf32> to vector<8x32xf32>
    %14 = arith.addf %11, %13 : vector<8x32xf32>
    %15 = arith.truncf %14 : vector<8x32xf32> to vector<8x32xbf16>
    %c0_11 = arith.constant 0 : index
    %c0_12 = arith.constant 0 : index
    %16 = vector.load %arg6[%c0_11, %c0_12] : memref<32x512xbf16, #tpu.memory_space<vmem>>, vector<32x512xbf16>
    %cst_13 = arith.constant dense<0.000000e+00> : vector<8x512xf32>
    %17 = tpu.matmul %15, %16, %cst_13 {dimension_numbers = #tpu.dot_dimension_numbers<[1], [0], [0], [1], [0, 0, 1, 1], [], []>} : vector<8x32xbf16>, vector<32x512xbf16>, vector<8x512xf32> -> vector<8x512xf32>
    %c0_14 = arith.constant 0 : index
    %c0_15 = arith.constant 0 : index
    %18 = vector.load %arg7[%c0_14, %c0_15] : memref<1x512xf32, #tpu.memory_space<vmem>>, vector<1x512xf32>
    %19 = vector.broadcast %18 : vector<1x512xf32> to vector<8x512xf32>
    %20 = arith.addf %17, %19 : vector<8x512xf32>
    %cst_16 = arith.constant 0.000000e+00 : f32
    %21 = vector.broadcast %cst_16 : f32 to vector<8x512xf32>
    %22 = arith.maximumf %20, %21 : vector<8x512xf32>
    %23 = arith.truncf %22 : vector<8x512xf32> to vector<8x512xbf16>
    %c0_17 = arith.constant 0 : index
    %c0_18 = arith.constant 0 : index
    %24 = vector.load %arg8[%c0_17, %c0_18] : memref<512x784xbf16, #tpu.memory_space<vmem>>, vector<512x784xbf16>
    %cst_19 = arith.constant dense<0.000000e+00> : vector<8x784xf32>
    %25 = tpu.matmul %23, %24, %cst_19 {dimension_numbers = #tpu.dot_dimension_numbers<[1], [0], [0], [1], [0, 0, 1, 1], [], []>} : vector<8x512xbf16>, vector<512x784xbf16>, vector<8x784xf32> -> vector<8x784xf32>
    %c0_20 = arith.constant 0 : index
    %c0_21 = arith.constant 0 : index
    %26 = vector.load %arg9[%c0_20, %c0_21] : memref<1x784xf32, #tpu.memory_space<vmem>>, vector<1x784xf32>
    %27 = vector.broadcast %26 : vector<1x784xf32> to vector<8x784xf32>
    %28 = arith.addf %25, %27 : vector<8x784xf32>
    %cst_22 = arith.constant 0.000000e+00 : f32
    %29 = vector.broadcast %cst_22 : f32 to vector<8x784xf32>
    %30 = arith.subf %29, %28 : vector<8x784xf32>
    %31 = math.exp %30 : vector<8x784xf32>
    %cst_23 = arith.constant 1.000000e+00 : f32
    %32 = vector.broadcast %cst_23 : f32 to vector<8x784xf32>
    %33 = arith.addf %32, %31 : vector<8x784xf32>
    %34 = tpu.reciprocal %33 {approx = true} : vector<8x784xf32> -> vector<8x784xf32>
    %c0_24 = arith.constant 0 : index
    %c0_25 = arith.constant 0 : index
    %35 = vector.load %arg10[%c0_24, %c0_25] : memref<8x784xf32, #tpu.memory_space<vmem>>, vector<8x784xf32>
    tpu.vector_store %arg10[%c0_24, %c0_25], %34 {strides = array<i32>} : memref<8x784xf32, #tpu.memory_space<vmem>>, vector<8x784xf32>,
    return
  }
  func.func @transform_0(%arg0: i32) -> (i32, i32) {
    %c0_i32 = arith.constant 0 : i32
    %c0_i32_0 = arith.constant 0 : i32
    return %arg0, %c0_i32 : i32, i32
  }
  func.func @transform_1(%arg0: i32) -> (i32, i32) {
    %c0_i32 = arith.constant 0 : i32
    %c0_i32_0 = arith.constant 0 : i32
    %c0_i32_1 = arith.constant 0 : i32
    return %c0_i32, %c0_i32_0 : i32, i32
  }
  func.func @transform_2(%arg0: i32) -> (i32, i32) {
    %c0_i32 = arith.constant 0 : i32
    %c0_i32_0 = arith.constant 0 : i32
    %c0_i32_1 = arith.constant 0 : i32
    return %c0_i32, %c0_i32_0 : i32, i32
  }
  func.func @transform_3(%arg0: i32) -> (i32, i32) {
    %c0_i32 = arith.constant 0 : i32
    %c0_i32_0 = arith.constant 0 : i32
    %c0_i32_1 = arith.constant 0 : i32
    return %c0_i32, %c0_i32_0 : i32, i32
  }
  func.func @transform_4(%arg0: i32) -> (i32, i32) {
    %c0_i32 = arith.constant 0 : i32
    %c0_i32_0 = arith.constant 0 : i32
    %c0_i32_1 = arith.constant 0 : i32
    return %c0_i32, %c0_i32_0 : i32, i32
  }
  func.func @transform_5(%arg0: i32) -> (i32, i32) {
    %c0_i32 = arith.constant 0 : i32
    %c0_i32_0 = arith.constant 0 : i32
    %c0_i32_1 = arith.constant 0 : i32
    return %c0_i32, %c0_i32_0 : i32, i32
  }
  func.func @transform_6(%arg0: i32) -> (i32, i32) {
    %c0_i32 = arith.constant 0 : i32
    %c0_i32_0 = arith.constant 0 : i32
    %c0_i32_1 = arith.constant 0 : i32
    return %c0_i32, %c0_i32_0 : i32, i32
  }
  func.func @transform_7(%arg0: i32) -> (i32, i32) {
    %c0_i32 = arith.constant 0 : i32
    %c0_i32_0 = arith.constant 0 : i32
    %c0_i32_1 = arith.constant 0 : i32
    return %c0_i32, %c0_i32_0 : i32, i32
  }
  func.func @transform_8(%arg0: i32) -> (i32, i32) {
    %c0_i32 = arith.constant 0 : i32
    %c0_i32_0 = arith.constant 0 : i32
    %c0_i32_1 = arith.constant 0 : i32
    return %c0_i32, %c0_i32_0 : i32, i32
  }
  func.func @transform_9(%arg0: i32) -> (i32, i32) {
    %c0_i32 = arith.constant 0 : i32
    %c0_i32_0 = arith.constant 0 : i32
    return %arg0, %c0_i32 : i32, i32
  }
}

</mosaic_0001>

<bundles_post_ra>
// kernel: tpu_custom_call.1
= control target key start
LH: loop header
LB: loop body
LE: loop exit
PB: predicated region body
PF: predicated region fallthrough
CT: control target
= control target key end

     0   :  { %14 = vsyncpa [#allocation3], 0  ;;  %v5380_v38 = vmov 1983009808   ;;  %v57_v40 = vlaneseq  ;;  %vm1333_vm0 = vcmask 130048   ;;  %vm2087_vm1 = vcmask 261120   ;;  %s6977_s0 = inlined_call_operand.vmem [shape: f32[2,784], index: 0, kind: input, shape index: {}]   ;;  %s6978_s1 = inlined_call_operand.vmem [shape: bf16[784,512], index: 1, kind: input, shape index: {}]   ;;  %s6979_s2 = inlined_call_operand.vmem [shape: f32[1,512], index: 2, kind: input, shape index: {}]   ;;  %s6980_s3 = inlined_call_operand.vmem [shape: bf16[512,32], index: 3, kind: input, shape index: {}]   ;;  %s6981_s4 = inlined_call_operand.vmem [shape: f32[1,32], index: 4, kind: input, shape index: {}]   ;;  %s6982_s5 = inlined_call_operand.vmem [shape: bf16[32,512], index: 5, kind: input, shape index: {}]   ;;  %s6983_s6 = inlined_call_operand.vmem [shape: f32[1,512], index: 6, kind: input, shape index: {}]   ;;  %s6984_s7 = inlined_call_operand.vmem [shape: bf16[512,784], index: 7, kind: input, shape index: {}]   ;;  %s6985_s8 = inlined_call_operand.vmem [shape: f32[1,784], index: 8, kind: input, shape index: {}]   ;;  %s6986_s9 = inlined_call_operand.hbm [shape: f32[2,784], index: 9, kind: output, shape index: {}]  }
   0x1   :  { %v4660_v0 = vld [vmem:[%s6978_s1 + $0xe4] ss:$16 sps:$4 sm:$0xff]   ;;  %v4664_v2 = vld [vmem:[%s6978_s1 + $0xe0] ss:$16 sps:$4 sm:$0xff]   ;;  %v55_v39 = vunpack.c.l.s4 %v5380_v38  ;;  %v4758_v56 = vld [vmem:[%s6977_s0 + $0x1c] ss:$14 sps:$4 sm:$0xff]  }
   0x2   :  { %v4662_v1 = vld [vmem:[%s6978_s1 + $0x2e4] ss:$16 sps:$4 sm:$0xff]   ;;  %v4665_v3 = vld [vmem:[%s6978_s1 + $0x2e0] ss:$16 sps:$4 sm:$0xff]   ;;  %1337 = vmatprep.subr.bf16.mxu0 %v4660_v0  ;;  %v5561_v46 = vshrl.u32 %v57_v40, 7  ;;  %vm4074_vm2 = vcmask 1041408  }
   0x3   :  { %v4666_v4 = vld [vmem:[%s6978_s1 + $0xc4] ss:$16 sps:$4 sm:$0xff]   ;;  %1378 = vmatprep.subr.bf16.mxu1 %v4662_v1  ;;  %1338 = vmatpush1.bf16.msra.mxu0 %v4664_v2  ;;  %v4670_v6 = vld [vmem:[%s6978_s1 + $0xc0] ss:$16 sps:$4 sm:$0xff]   ;;  %v56_v45 = vunpack.c.0.s8 %v55_v39  ;;  %v4783_v40 = vld [vmem:[%s6978_s1 + $0xcc] ss:$16 sps:$4 sm:$0xff]  }
   0x4   :  { %v4668_v5 = vld [vmem:[%s6978_s1 + $0x2c4] ss:$16 sps:$4 sm:$0xff]   ;;  %1379 = vmatpush1.bf16.msra.mxu1 %v4665_v3  ;;  %1339 = vmatprep.subr.bf16.mxu0 %v4666_v4  ;;  %v4671_v7 = vld [vmem:[%s6978_s1 + $0x2c0] ss:$16 sps:$4 sm:$0xff]   ;;  %vm4075_vm3 = vcmask 1043458   ;;  %vm4077_vm5 = vcmask 128004  }
   0x5   :  { %1380 = vmatprep.subr.bf16.mxu1 %v4668_v5  ;;  %v4672_v8 = vld [vmem:[%s6978_s1 + $0xa4] ss:$16 sps:$4 sm:$0xff]   ;;  %v4676_v10 = vld [vmem:[%s6978_s1 + $0xa0] ss:$16 sps:$4 sm:$0xff]   ;;  %v5579_v52 = vsub.s32 %v56_v45, %v5561_v46  ;;  %v4787_v45 = vld [vmem:[%s6978_s1 + $0xa8] ss:$16 sps:$4 sm:$0xff]  }
   0x6   :  { %v4674_v9 = vld [vmem:[%s6978_s1 + $0x2a4] ss:$16 sps:$4 sm:$0xff]   ;;  %v4677_v11 = vld [vmem:[%s6978_s1 + $0x2a0] ss:$16 sps:$4 sm:$0xff]   ;;  %vm4076_vm4 = vmor %vm4075_vm3, %vm4074_vm2 }
   0x7   :  { %1340 = vmatpush1.bf16.msra.mxu0 %v4670_v6  ;;  %v4678_v12 = vld [vmem:[%s6978_s1 + $0x84] ss:$16 sps:$4 sm:$0xff]   ;;  %v4682_v14 = vld [vmem:[%s6978_s1 + $0x80] ss:$16 sps:$4 sm:$0xff]   ;;  %v74_v61 = vrot.slane %v4758_v56, %v5579_v52  ;;  %vm4078_vm6 = vmor %vm4077_vm5, %vm4076_vm4 }
   0x8   :  { %1381 = vmatpush1.bf16.msra.mxu1 %v4671_v7  ;;  %1341 = vmatprep.subr.bf16.mxu0 %v4672_v8  ;;  %v4680_v13 = vld [vmem:[%s6978_s1 + $0x284] ss:$16 sps:$4 sm:$0xff]   ;;  %v4683_v15 = vld [vmem:[%s6978_s1 + $0x280] ss:$16 sps:$4 sm:$0xff]  }
   0x9   :  { %1382 = vmatprep.subr.bf16.mxu1 %v4674_v9  ;;  %v4684_v16 = vld [vmem:[%s6978_s1 + $0x64] ss:$16 sps:$4 sm:$0xff]   ;;  %v4688_v18 = vld [vmem:[%s6978_s1 + $0x60] ss:$16 sps:$4 sm:$0xff]  }
   0xa   :  { %v4686_v17 = vld [vmem:[%s6978_s1 + $0x264] ss:$16 sps:$4 sm:$0xff]   ;;  %v4689_v19 = vld [vmem:[%s6978_s1 + $0x260] ss:$16 sps:$4 sm:$0xff]  }
   0xb   :  { %1342 = vmatpush1.bf16.msra.mxu0 %v4676_v10  ;;  %v4690_v20 = vld [vmem:[%s6978_s1 + $0x44] ss:$16 sps:$4 sm:$0xff]   ;;  %v4694_v22 = vld [vmem:[%s6978_s1 + $0x40] ss:$16 sps:$4 sm:$0xff]  }
   0xc   :  { %1383 = vmatpush1.bf16.msra.mxu1 %v4677_v11  ;;  %1343 = vmatprep.subr.bf16.mxu0 %v4678_v12  ;;  %v4692_v21 = vld [vmem:[%s6978_s1 + $0x244] ss:$16 sps:$4 sm:$0xff]   ;;  %v4695_v23 = vld [vmem:[%s6978_s1 + $0x240] ss:$16 sps:$4 sm:$0xff]  }
   0xd   :  { %1384 = vmatprep.subr.bf16.mxu1 %v4680_v13  ;;  %v4696_v24 = vld [vmem:[%s6978_s1 + $0x24] ss:$16 sps:$4 sm:$0xff]   ;;  %v4700_v26 = vld [vmem:[%s6978_s1 + $0x20] ss:$16 sps:$4 sm:$0xff]  }
   0xe   :  { %v4698_v25 = vld [vmem:[%s6978_s1 + $0x224] ss:$16 sps:$4 sm:$0xff]   ;;  %v4701_v27 = vld [vmem:[%s6978_s1 + $0x220] ss:$16 sps:$4 sm:$0xff]  }
   0xf   :  { %1344 = vmatpush1.bf16.msra.mxu0 %v4682_v14  ;;  %v4702_v28 = vld [vmem:[%s6978_s1 + $0x4] ss:$16 sps:$4 sm:$0xff]   ;;  %v4706_v30 = vld [vmem:[%s6978_s1] ss:$16 sps:$4 sm:$0xff]  }
  0x10   :  { %1385 = vmatpush1.bf16.msra.mxu1 %v4683_v15  ;;  %1345 = vmatprep.subr.bf16.mxu0 %v4684_v16  ;;  %v4704_v29 = vld [vmem:[%s6978_s1 + $0x204] ss:$16 sps:$4 sm:$0xff]   ;;  %v4707_v31 = vld [vmem:[%s6978_s1 + $0x200] ss:$16 sps:$4 sm:$0xff]  }
  0x11   :  { %1386 = vmatprep.subr.bf16.mxu1 %v4686_v17  ;;  %v4708_v32 = vld [vmem:[%s6978_s1 + $0x1e4] ss:$16 sps:$4 sm:$0xff]   ;;  %v4712_v34 = vld [vmem:[%s6978_s1 + $0x1e0] ss:$16 sps:$4 sm:$0xff]  }
  0x12   :  { %v4710_v33 = vld [vmem:[%s6978_s1 + $0x3e4] ss:$16 sps:$4 sm:$0xff]   ;;  %v4713_v35 = vld [vmem:[%s6978_s1 + $0x3e0] ss:$16 sps:$4 sm:$0xff]  }
  0x13   :  { %1346 = vmatpush1.bf16.msra.mxu0 %v4688_v18  ;;  %v4714_v36 = vld [vmem:[%s6978_s1 + $0x1c4] ss:$16 sps:$4 sm:$0xff]   ;;  %v4718_v41 = vld [vmem:[%s6978_s1 + $0x1c0] ss:$16 sps:$4 sm:$0xff]  }
  0x14   :  { %1387 = vmatpush1.bf16.msra.mxu1 %v4689_v19  ;;  %1347 = vmatprep.subr.bf16.mxu0 %v4690_v20  ;;  %v4716_v37 = vld [vmem:[%s6978_s1 + $0x3c4] ss:$16 sps:$4 sm:$0xff]   ;;  %v4719_v42 = vld [vmem:[%s6978_s1 + $0x3c0] ss:$16 sps:$4 sm:$0xff]  }
  0x15   :  { %1388 = vmatprep.subr.bf16.mxu1 %v4692_v21  ;;  %v4720_v43 = vld [vmem:[%s6978_s1 + $0x1a4] ss:$16 sps:$4 sm:$0xff]   ;;  %v4724_v47 = vld [vmem:[%s6978_s1 + $0x1a0] ss:$16 sps:$4 sm:$0xff]  }
  0x16   :  { %v4722_v44 = vld [vmem:[%s6978_s1 + $0x3a4] ss:$16 sps:$4 sm:$0xff]   ;;  %v4725_v48 = vld [vmem:[%s6978_s1 + $0x3a0] ss:$16 sps:$4 sm:$0xff]  }
  0x17   :  { %1348 = vmatpush1.bf16.msra.mxu0 %v4694_v22  ;;  %v4726_v49 = vld [vmem:[%s6978_s1 + $0x184] ss:$16 sps:$4 sm:$0xff]   ;;  %v4730_v51 = vld [vmem:[%s6978_s1 + $0x180] ss:$16 sps:$4 sm:$0xff]  }
  0x18   :  { %1389 = vmatpush1.bf16.msra.mxu1 %v4695_v23  ;;  %1349 = vmatprep.subr.bf16.mxu0 %v4696_v24  ;;  %v4728_v50 = vld [vmem:[%s6978_s1 + $0x384] ss:$16 sps:$4 sm:$0xff]   ;;  %v4731_v53 = vld [vmem:[%s6978_s1 + $0x380] ss:$16 sps:$4 sm:$0xff]  }
  0x19   :  { %1390 = vmatprep.subr.bf16.mxu1 %v4698_v25  ;;  %v4732_v54 = vld [vmem:[%s6978_s1 + $0x164] ss:$16 sps:$4 sm:$0xff]   ;;  %v4756_v55 = vld [vmem:[%s6977_s0] ss:$14 sps:$4 sm:$0xff]  }
  0x1a   :  { %v4760_v57 = vld [vmem:[%s6977_s0 + $0x4] ss:$14 sps:$4 sm:$0xff]   ;;  %v4761_v58 = vld [vmem:[%s6977_s0 + $0x20] ss:$14 sps:$4 sm:$0xff]   ;;  %v60_v60 = vrot.slane %v4756_v55, %v5579_v52  ;;  %v4799_v55 = vld [vmem:[%s6978_s1 + $0x68] ss:$16 sps:$4 sm:$0xff]  }
  0x1b   :  { %1350 = vmatpush1.bf16.msra.mxu0 %v4700_v26  ;;  %v4734_v59 = vld [vmem:[%s6978_s1 + $0x364] ss:$16 sps:$4 sm:$0xff]   ;;  %v67_v62 = vrot.slane %v4760_v57, %v5579_v52  ;;  %v81_v63 = vrot.slane %v4761_v58, %v5579_v52  ;;  %v4736_v0 = vld [vmem:[%s6978_s1 + $0x160] ss:$16 sps:$4 sm:$0xff]  }
  0x1c   :  { %1391 = vmatpush1.bf16.msra.mxu1 %v4701_v27  ;;  %1351 = vmatprep.subr.bf16.mxu0 %v4702_v28  ;;  %v83_v1 = vcombine.high %v60_v60, %v74_v61  ;;  %v4737_v2 = vld [vmem:[%s6978_s1 + $0x360] ss:$16 sps:$4 sm:$0xff]   ;;  %v4738_v3 = vld [vmem:[%s6978_s1 + $0x144] ss:$16 sps:$4 sm:$0xff]   ;;  %v82_v18 = vcombine.low %v60_v60, %v74_v61  ;;  %v4807_v60 = vld [vmem:[%s6978_s1 + $0x4c] ss:$16 sps:$4 sm:$0xff]  }
  0x1d   :  { %1392 = vmatprep.subr.bf16.mxu1 %v4704_v29  ;;  %v85_v4 = vcombine.high %v67_v62, %v81_v63  ;;  %v4740_v5 = vld [vmem:[%s6978_s1 + $0x344] ss:$16 sps:$4 sm:$0xff]   ;;  %v4742_v6 = vld [vmem:[%s6978_s1 + $0x140] ss:$16 sps:$4 sm:$0xff]   ;;  %v84_v20 = vcombine.low %v67_v62, %v81_v63 }
  0x1e   :  { %v5621_v7 = vpack.c.bf16 %v83_v1, %v83_v1  ;;  %v4743_v8 = vld [vmem:[%s6978_s1 + $0x340] ss:$16 sps:$4 sm:$0xff]   ;;  %v4744_v10 = vld [vmem:[%s6978_s1 + $0x124] ss:$16 sps:$4 sm:$0xff]   ;;  %v5666_v24 = vpack.c.bf16 %v82_v18, %v82_v18 }
  0x1f   :  { %1352 = vmatpush1.bf16.msra.mxu0 %v4706_v30  ;;  %v5626_v9 = vpack.c.bf16 %v85_v4, %v85_v4  ;;  %v4746_v11 = vld [vmem:[%s6978_s1 + $0x324] ss:$16 sps:$4 sm:$0xff]   ;;  %v4748_v12 = vld [vmem:[%s6978_s1 + $0x120] ss:$16 sps:$4 sm:$0xff]   ;;  %v5671_v26 = vpack.c.bf16 %v84_v20, %v84_v20 }
  0x20   :  { %1393 = vmatpush1.bf16.msra.mxu1 %v4707_v31  ;;  %1353 = vmatprep.subr.bf16.mxu0 %v4708_v32  ;;  %v4749_v13 = vld [vmem:[%s6978_s1 + $0x320] ss:$16 sps:$4 sm:$0xff]   ;;  %v4750_v14 = vld [vmem:[%s6978_s1 + $0x104] ss:$16 sps:$4 sm:$0xff]   ;;  %v4773_v31 = vld [vmem:[%s6978_s1 + $0xec] ss:$16 sps:$4 sm:$0xff]  }
  0x21   :  { %1394 = vmatprep.subr.bf16.mxu1 %v4710_v33  ;;  %1369 = vmatprep.mubr.bf16.mxu0 %v5621_v7  ;;  %v4752_v15 = vld [vmem:[%s6978_s1 + $0x304] ss:$16 sps:$4 sm:$0xff]   ;;  %v4754_v16 = vld [vmem:[%s6978_s1 + $0x100] ss:$16 sps:$4 sm:$0xff]  }
  0x22   :  { %1410 = vmatprep.mubr.bf16.mxu1 %v5626_v9  ;;  %v4755_v17 = vld [vmem:[%s6978_s1 + $0x300] ss:$16 sps:$4 sm:$0xff]   ;;  %v4777_v19 = vld [vmem:[%s6977_s0 + $0xc] ss:$14 sps:$4 sm:$0x33]  }
  0x23   :  { %1354 = vmatpush2.bf16.msra.mxu0 %v4712_v34  ;;  %v4779_v21 = vld [vmem:[%s6977_s0 + $0x28] ss:$14 sps:$4 sm:$0x33]   ;;  %v4762_v25 = vld [vmem:[%s6978_s1 + $0x4e0] ss:$16 sps:$4 sm:$0xff]   ;;  %v103_v28 = vrot.slane %v4777_v19, %v5579_v52 }
  0x24   :  { %1395 = vmatpush2.bf16.msra.mxu1 %v4713_v35  ;;  %1355 = vmatprep.subr.bf16.mxu0 %v4714_v36  ;;  %v4764_v22 = vld [vmem:[%s6978_s1 + $0x4e4] ss:$16 sps:$4 sm:$0xff]   ;;  %v4765_v27 = vld [vmem:[%s6978_s1 + $0x600] ss:$16 sps:$4 sm:$0xff]   ;;  %v117_v29 = vrot.slane %v4779_v21, %v5579_v52  ;;  %v5381_v35 = vmov 0  }
  0x25   :  { %1396 = vmatprep.subr.bf16.mxu1 %v4716_v37  ;;  %v4767_v23 = vld [vmem:[%s6978_s1 + $0x604] ss:$16 sps:$4 sm:$0xff]   ;;  %v4768_v32 = vld [vmem:[%s6978_s1 + $0x4c0] ss:$16 sps:$4 sm:$0xff]   ;;  %v4771_v36 = vld [vmem:[%s6978_s1 + $0xe8] ss:$16 sps:$4 sm:$0xff]  }
  0x26   :  { %v4770_v30 = vld [vmem:[%s6978_s1 + $0x4c4] ss:$16 sps:$4 sm:$0xff]   ;;  %v120_v33 = vcombine.low %v103_v28, %v117_v29  ;;  %v4774_v37 = vld [vmem:[%s6978_s1 + $0x4a0] ss:$16 sps:$4 sm:$0xff]   ;;  %v4829_v19 = vld [vmem:[%s6978_s1 + $0x1c8] ss:$16 sps:$4 sm:$0xff]  }
  0x27   :  { %1356 = vmatpush2.bf16.msra.mxu0 %v4718_v41  ;;  %v4776_v34 = vld [vmem:[%s6978_s1 + $0x4a4] ss:$16 sps:$4 sm:$0xff]   ;;  %v4781_v41 = vld [vmem:[%s6978_s1 + $0xc8] ss:$16 sps:$4 sm:$0xff]   ;;  %v4802_v56 = vld [vmem:[%s6978_s1 + $0x420] ss:$16 sps:$4 sm:$0xff]  }
  0x28   :  { %1397 = vmatpush2.bf16.msra.mxu1 %v4719_v42  ;;  %1357 = vmatprep.subr.bf16.mxu0 %v4720_v43  ;;  %v5699_v38 = vpack.c.bf16 %v120_v33, %v120_v33  ;;  %v4786_v39 = vld [vmem:[%s6978_s1 + $0x484] ss:$16 sps:$4 sm:$0xff]   ;;  %v4784_v42 = vld [vmem:[%s6978_s1 + $0x480] ss:$16 sps:$4 sm:$0xff]   ;;  %v4837_v21 = vld [vmem:[%s6978_s1 + $0x1ac] ss:$16 sps:$4 sm:$0xff]  }
  0x29   :  { %1398 = vmatprep.subr.bf16.mxu1 %v4722_v44  ;;  %v4792_v43 = vld [vmem:[%s6978_s1 + $0x464] ss:$16 sps:$4 sm:$0xff]   ;;  %v4789_v44 = vld [vmem:[%s6978_s1 + $0xac] ss:$16 sps:$4 sm:$0xff]   ;;  %v4808_v63 = vld [vmem:[%s6978_s1 + $0x400] ss:$16 sps:$4 sm:$0xff]  }
  0x2a   :  { %v4810_v57 = vld [vmem:[%s6978_s1 + $0x404] ss:$16 sps:$4 sm:$0xff]   ;;  %v4832_v18 = vld [vmem:[%s6978_s1 + $0x580] ss:$16 sps:$4 sm:$0xff]   ;;  %v4841_v29 = vld [vmem:[%s6978_s1 + $0x188] ss:$16 sps:$4 sm:$0xff]  }
  0x2b   :  { %1358 = vmatpush2.bf16.msra.mxu0 %v4724_v47  ;;  %v4790_v47 = vld [vmem:[%s6978_s1 + $0x460] ss:$16 sps:$4 sm:$0xff]   ;;  %v4859_v58 = vld [vmem:[%s6977_s0 + $0x8] ss:$14 sps:$4 sm:$0xff]  }
  0x2c   :  { %1399 = vmatpush2.bf16.msra.mxu1 %v4725_v48  ;;  %1359 = vmatprep.subr.bf16.mxu0 %v4726_v49  ;;  %v4798_v48 = vld [vmem:[%s6978_s1 + $0x444] ss:$16 sps:$4 sm:$0xff]   ;;  %v4795_v49 = vld [vmem:[%s6978_s1 + $0x8c] ss:$16 sps:$4 sm:$0xff]   ;;  %v5765_v61 = vrot.slane %v4859_v58, %v5579_v52  ;;  %v4844_v28 = vld [vmem:[%s6978_s1 + $0x540] ss:$16 sps:$4 sm:$0xff]  }
  0x2d   :  { %1400 = vmatprep.subr.bf16.mxu1 %v4728_v50  ;;  %v4793_v50 = vld [vmem:[%s6978_s1 + $0x88] ss:$16 sps:$4 sm:$0xff]   ;;  %v4816_v1 = vld [vmem:[%s6978_s1 + $0x5e4] ss:$16 sps:$4 sm:$0xff]  }
  0x2e   :  { %v4840_v20 = vld [vmem:[%s6978_s1 + $0x564] ss:$16 sps:$4 sm:$0xff]   ;;  %v4847_v33 = vld [vmem:[%s6978_s1 + $0x168] ss:$16 sps:$4 sm:$0xff]  }
  0x2f   :  { %1360 = vmatpush2.bf16.msra.mxu0 %v4730_v51  ;;  %v4796_v51 = vld [vmem:[%s6978_s1 + $0x440] ss:$16 sps:$4 sm:$0xff]   ;;  %v4879_v58 = vld [vmem:[%s6978_s1 + $0x4c8] ss:$16 sps:$4 sm:$0xff]  }
  0x30   :  { %1401 = vmatpush2.bf16.msra.mxu1 %v4731_v53  ;;  %1361 = vmatprep.subr.bf16.mxu0 %v4732_v54  ;;  %v4804_v53 = vld [vmem:[%s6978_s1 + $0x424] ss:$16 sps:$4 sm:$0xff]   ;;  %v4801_v54 = vld [vmem:[%s6978_s1 + $0x6c] ss:$16 sps:$4 sm:$0xff]  }
  0x31   :  { %1402 = vmatprep.subr.bf16.mxu1 %v4734_v59  ;;  %v4860_v59 = vld [vmem:[%s6977_s0 + $0x24] ss:$14 sps:$4 sm:$0xff]  }
  0x32   :  { %v5768_v62 = vrot.slane %v4860_v59, %v5579_v52  ;;  %v4890_v59 = vld [vmem:[%s6978_s1 + $0x26c] ss:$16 sps:$4 sm:$0xff]  }
  0x33   :  { %1362 = vmatpush2.bf16.msra.mxu0 %v4736_v0  ;;  %v4805_v0 = vld [vmem:[%s6978_s1 + $0x48] ss:$16 sps:$4 sm:$0xff]  }
  0x34   :  { %1403 = vmatpush2.bf16.msra.mxu1 %v4737_v2  ;;  %1363 = vmatprep.subr.bf16.mxu0 %v4738_v3  ;;  %v119_v2 = vcombine.high %v5765_v61, %v5768_v62  ;;  %v4813_v3 = vld [vmem:[%s6978_s1 + $0x2c] ss:$16 sps:$4 sm:$0xff]  }
  0x35   :  { %1404 = vmatprep.subr.bf16.mxu1 %v4740_v5  ;;  %v4814_v5 = vld [vmem:[%s6978_s1 + $0x5e0] ss:$16 sps:$4 sm:$0xff]  }
  0x36   :  { %v5784_v4 = vpack.c.bf16 %v119_v2, %v119_v2  ;;  %v4899_v2 = vld [vmem:[%s6978_s1 + $0x46c] ss:$16 sps:$4 sm:$0xff]  }
  0x37   :  { %1364 = vmatpush2.bf16.msra.mxu0 %v4742_v6  ;;  %v4811_v6 = vld [vmem:[%s6978_s1 + $0x28] ss:$16 sps:$4 sm:$0xff]  }
  0x38   :  { %1405 = vmatpush2.bf16.msra.mxu1 %v4743_v8  ;;  %1365 = vmatprep.subr.bf16.mxu0 %v4744_v10  ;;  %v4819_v8 = vld [vmem:[%s6978_s1 + $0xc] ss:$16 sps:$4 sm:$0xff]   ;;  %v4820_v10 = vld [vmem:[%s6978_s1 + $0x5c0] ss:$16 sps:$4 sm:$0xff]  }
  0x39   :  { %1406 = vmatprep.subr.bf16.mxu1 %v4746_v11  ;;  %v4817_v11 = vld [vmem:[%s6978_s1 + $0x8] ss:$16 sps:$4 sm:$0xff]  }
  0x3b   :  { %1366 = vmatpush2.bf16.msra.mxu0 %v4748_v12  ;;  %v4828_v12 = vld [vmem:[%s6978_s1 + $0x5a4] ss:$16 sps:$4 sm:$0xff]  }
  0x3c   :  { %1407 = vmatpush2.bf16.msra.mxu1 %v4749_v13  ;;  %1367 = vmatprep.subr.bf16.mxu0 %v4750_v14  ;;  %v4825_v13 = vld [vmem:[%s6978_s1 + $0x1ec] ss:$16 sps:$4 sm:$0xff]   ;;  %v4826_v14 = vld [vmem:[%s6978_s1 + $0x5a0] ss:$16 sps:$4 sm:$0xff]  }
  0x3d   :  { %1408 = vmatprep.subr.bf16.mxu1 %v4752_v15  ;;  %v4823_v15 = vld [vmem:[%s6978_s1 + $0x1e8] ss:$16 sps:$4 sm:$0xff]  }
  0x3f   :  { %1368 = vmatpush2.bf16.msra.mxu0 %v4754_v16  ;;  %v4834_v16 = vld [vmem:[%s6978_s1 + $0x584] ss:$16 sps:$4 sm:$0xff]  }
  0x40   :  { %1409 = vmatpush2.bf16.msra.mxu1 %v4755_v17  ;;  %1419 = vmatprep.subr.bf16.mxu0 %v4764_v22  ;;  %v4831_v17 = vld [vmem:[%s6978_s1 + $0x1cc] ss:$16 sps:$4 sm:$0xff]   ;;  %v4838_v22 = vld [vmem:[%s6978_s1 + $0x560] ss:$16 sps:$4 sm:$0xff]  }
  0x41   :  { %1474 = vmatprep.subr.bf16.mxu1 %v4767_v23  ;;  %v4835_v23 = vld [vmem:[%s6978_s1 + $0x1a8] ss:$16 sps:$4 sm:$0xff]  }
  0x42   :  { %1370 = vmatmul.mubr.bf16.vlgmr.msra.gmra.mxu0 %v5666_v24 }
  0x43   :  { %1411 = vmatmul.mubr.bf16.vlgmr.msra.gmra.mxu1 %v5671_v26  ;;  %1420 = vmatpush1.bf16.msra.mxu0 %v4762_v25  ;;  %v4846_v25 = vld [vmem:[%s6978_s1 + $0x544] ss:$16 sps:$4 sm:$0xff]  }
  0x44   :  { %1475 = vmatpush1.bf16.msra.mxu1 %v4765_v27  ;;  %1421 = vmatprep.subr.bf16.mxu0 %v4770_v30  ;;  %v4843_v27 = vld [vmem:[%s6978_s1 + $0x18c] ss:$16 sps:$4 sm:$0xff]   ;;  %v4852_v30 = vld [vmem:[%s6978_s1 + $0x524] ss:$16 sps:$4 sm:$0xff]  }
  0x45   :  { %1492 = vmatprep.mubr.bf16.mxu1 %v5381_v35  ;;  %1501 = vmatprep.subr.bf16.mxu1 %v4773_v31  ;;  %v4849_v31 = vld [vmem:[%s6978_s1 + $0x16c] ss:$16 sps:$4 sm:$0xff]  }
  0x46   :  { %1451 = vmatprep.mubr.bf16.mxu0 %v5784_v4 }
  0x47   :  { %1422 = vmatpush1.bf16.msra.mxu0 %v4768_v32  ;;  %v4850_v32 = vld [vmem:[%s6978_s1 + $0x520] ss:$16 sps:$4 sm:$0xff]  }
  0x48   :  { %1423 = vmatprep.subr.bf16.mxu0 %v4776_v34  ;;  %v4858_v34 = vld [vmem:[%s6978_s1 + $0x504] ss:$16 sps:$4 sm:$0xff]  }
  0x4b   :  { %4298 = vmatmul.mubr.msk.bf16.vlgmr.msra.gmra.mxu1 %vm1333_vm0, %v5699_v38  ;;  %1424 = vmatpush1.bf16.msra.mxu0 %v4774_v37  ;;  %v118_v37 = vcombine.low %v5765_v61, %v5768_v62  ;;  %v4888_v61 = vld [vmem:[%s6978_s1 + $0x268] ss:$16 sps:$4 sm:$0xff]  }
  0x4c   :  { %1502 = vmatpush1.bf16.msra.mxu1 %v4771_v36  ;;  %1425 = vmatprep.subr.bf16.mxu0 %v4786_v39  ;;  %v4855_v36 = vld [vmem:[%s6978_s1 + $0x14c] ss:$16 sps:$4 sm:$0xff]   ;;  %v4856_v39 = vld [vmem:[%s6978_s1 + $0x500] ss:$16 sps:$4 sm:$0xff]   ;;  %v4885_v62 = vld [vmem:[%s6978_s1 + $0x4a8] ss:$16 sps:$4 sm:$0xff]  }
  0x4d   :  { %1503 = vmatprep.subr.bf16.mxu1 %v4783_v40  ;;  %1533 = vmatprep.mubr.bf16.mxu1 %v5621_v7  ;;  %v4822_v7 = vld [vmem:[%s6978_s1 + $0x5c4] ss:$16 sps:$4 sm:$0xff]   ;;  %v4853_v40 = vld [vmem:[%s6978_s1 + $0x148] ss:$16 sps:$4 sm:$0xff]  }
  0x4f   :  { %1426 = vmatpush1.bf16.msra.mxu0 %v4784_v42  ;;  %v4863_v42 = vld [vmem:[%s6978_s1 + $0x12c] ss:$16 sps:$4 sm:$0xff]  }
  0x50   :  { %1504 = vmatpush1.bf16.msra.mxu1 %v4781_v41  ;;  %1427 = vmatprep.subr.bf16.mxu0 %v4792_v43  ;;  %v4866_v41 = vld [vmem:[%s6978_s1 + $0x2ec] ss:$16 sps:$4 sm:$0xff]   ;;  %v5885_v43 = vpack.c.bf16 %v118_v37, %v118_v37  ;;  %v4939_v37 = vld [vmem:[%s6978_s1 + $0x588] ss:$16 sps:$4 sm:$0xff]  }
  0x51   :  { %1505 = vmatprep.subr.bf16.mxu1 %v4789_v44  ;;  %v4864_v44 = vld [vmem:[%s6978_s1 + $0x2e8] ss:$16 sps:$4 sm:$0xff]  }
  0x53   :  { %1428 = vmatpush1.bf16.msra.mxu0 %v4790_v47  ;;  %v4872_v47 = vld [vmem:[%s6978_s1 + $0x2cc] ss:$16 sps:$4 sm:$0xff]  }
  0x54   :  { %1506 = vmatpush1.bf16.msra.mxu1 %v4787_v45  ;;  %1429 = vmatprep.subr.bf16.mxu0 %v4798_v48  ;;  %v4861_v45 = vld [vmem:[%s6978_s1 + $0x128] ss:$16 sps:$4 sm:$0xff]   ;;  %v4869_v48 = vld [vmem:[%s6978_s1 + $0x10c] ss:$16 sps:$4 sm:$0xff]  }
  0x55   :  { %1507 = vmatprep.subr.bf16.mxu1 %v4795_v49  ;;  %v4870_v49 = vld [vmem:[%s6978_s1 + $0x2c8] ss:$16 sps:$4 sm:$0xff]  }
  0x57   :  { %1430 = vmatpush1.bf16.msra.mxu0 %v4796_v51  ;;  %v4878_v51 = vld [vmem:[%s6978_s1 + $0x2ac] ss:$16 sps:$4 sm:$0xff]  }
  0x58   :  { %1508 = vmatpush1.bf16.msra.mxu1 %v4793_v50  ;;  %1431 = vmatprep.subr.bf16.mxu0 %v4804_v53  ;;  %v4867_v50 = vld [vmem:[%s6978_s1 + $0x108] ss:$16 sps:$4 sm:$0xff]   ;;  %v4875_v53 = vld [vmem:[%s6978_s1 + $0x4ec] ss:$16 sps:$4 sm:$0xff]  }
  0x59   :  { %1509 = vmatprep.subr.bf16.mxu1 %v4801_v54  ;;  %v4873_v54 = vld [vmem:[%s6978_s1 + $0x4e8] ss:$16 sps:$4 sm:$0xff]  }
  0x5b   :  { %1432 = vmatpush1.bf16.msra.mxu0 %v4802_v56  ;;  %v4884_v56 = vld [vmem:[%s6978_s1 + $0x28c] ss:$16 sps:$4 sm:$0xff]  }
  0x5c   :  { %1510 = vmatpush1.bf16.msra.mxu1 %v4799_v55  ;;  %1433 = vmatprep.subr.bf16.mxu0 %v4810_v57  ;;  %v4881_v55 = vld [vmem:[%s6978_s1 + $0x4cc] ss:$16 sps:$4 sm:$0xff]   ;;  %v4882_v57 = vld [vmem:[%s6978_s1 + $0x288] ss:$16 sps:$4 sm:$0xff]  }
  0x5d   :  { %1511 = vmatprep.subr.bf16.mxu1 %v4807_v60  ;;  %v4887_v60 = vld [vmem:[%s6978_s1 + $0x4ac] ss:$16 sps:$4 sm:$0xff]  }
  0x5f   :  { %1434 = vmatpush1.bf16.msra.mxu0 %v4808_v63  ;;  %v4893_v63 = vld [vmem:[%s6978_s1 + $0x48c] ss:$16 sps:$4 sm:$0xff]  }
  0x60   :  { %1512 = vmatpush1.bf16.msra.mxu1 %v4805_v0  ;;  %1435 = vmatprep.subr.bf16.mxu0 %v4816_v1  ;;  %v4891_v0 = vld [vmem:[%s6978_s1 + $0x488] ss:$16 sps:$4 sm:$0xff]  }
  0x61   :  { %1513 = vmatprep.subr.bf16.mxu1 %v4813_v3  ;;  %v4894_v1 = vld [vmem:[%s6978_s1 + $0x248] ss:$16 sps:$4 sm:$0xff]   ;;  %v4902_v3 = vld [vmem:[%s6978_s1 + $0x22c] ss:$16 sps:$4 sm:$0xff]  }
  0x63   :  { %1436 = vmatpush2.bf16.msra.mxu0 %v4814_v5  ;;  %v4897_v5 = vld [vmem:[%s6978_s1 + $0x468] ss:$16 sps:$4 sm:$0xff]  }
  0x64   :  { %1514 = vmatpush1.bf16.msra.mxu1 %v4811_v6  ;;  %1437 = vmatprep.subr.bf16.mxu0 %v4822_v7  ;;  %v4908_v6 = vld [vmem:[%s6978_s1 + $0x20c] ss:$16 sps:$4 sm:$0xff]  }
  0x65   :  { %1515 = vmatprep.subr.bf16.mxu1 %v4819_v8  ;;  %v4905_v7 = vld [vmem:[%s6978_s1 + $0x44c] ss:$16 sps:$4 sm:$0xff]   ;;  %v4906_v8 = vld [vmem:[%s6978_s1 + $0x208] ss:$16 sps:$4 sm:$0xff]  }
  0x67   :  { %1438 = vmatpush2.bf16.msra.mxu0 %v4820_v10  ;;  %v4903_v10 = vld [vmem:[%s6978_s1 + $0x448] ss:$16 sps:$4 sm:$0xff]  }
  0x68   :  { %1516 = vmatpush1.bf16.msra.mxu1 %v4817_v11  ;;  %1439 = vmatprep.subr.bf16.mxu0 %v4828_v12  ;;  %v4914_v11 = vld [vmem:[%s6978_s1 + $0x3ec] ss:$16 sps:$4 sm:$0xff]  }
  0x69   :  { %1517 = vmatprep.subr.bf16.mxu1 %v4825_v13  ;;  %v4911_v12 = vld [vmem:[%s6978_s1 + $0x42c] ss:$16 sps:$4 sm:$0xff]   ;;  %v4912_v13 = vld [vmem:[%s6978_s1 + $0x3e8] ss:$16 sps:$4 sm:$0xff]  }
  0x6b   :  { %1440 = vmatpush2.bf16.msra.mxu0 %v4826_v14  ;;  %v4909_v14 = vld [vmem:[%s6978_s1 + $0x428] ss:$16 sps:$4 sm:$0xff]  }
  0x6c   :  { %1518 = vmatpush2.bf16.msra.mxu1 %v4823_v15  ;;  %1441 = vmatprep.subr.bf16.mxu0 %v4834_v16  ;;  %v4920_v15 = vld [vmem:[%s6978_s1 + $0x3cc] ss:$16 sps:$4 sm:$0xff]  }
  0x6d   :  { %1519 = vmatprep.subr.bf16.mxu1 %v4831_v17  ;;  %v4917_v16 = vld [vmem:[%s6978_s1 + $0x40c] ss:$16 sps:$4 sm:$0xff]   ;;  %v4918_v17 = vld [vmem:[%s6978_s1 + $0x3c8] ss:$16 sps:$4 sm:$0xff]  }
  0x6f   :  { %1442 = vmatpush2.bf16.msra.mxu0 %v4832_v18  ;;  %v4915_v18 = vld [vmem:[%s6978_s1 + $0x408] ss:$16 sps:$4 sm:$0xff]  }
  0x70   :  { %1520 = vmatpush2.bf16.msra.mxu1 %v4829_v19  ;;  %1443 = vmatprep.subr.bf16.mxu0 %v4840_v20  ;;  %v4926_v19 = vld [vmem:[%s6978_s1 + $0x3ac] ss:$16 sps:$4 sm:$0xff]  }
  0x71   :  { %1521 = vmatprep.subr.bf16.mxu1 %v4837_v21  ;;  %v4923_v20 = vld [vmem:[%s6978_s1 + $0x5ec] ss:$16 sps:$4 sm:$0xff]   ;;  %v4924_v21 = vld [vmem:[%s6978_s1 + $0x3a8] ss:$16 sps:$4 sm:$0xff]  }
  0x73   :  { %1444 = vmatpush2.bf16.msra.mxu0 %v4838_v22  ;;  %v4921_v22 = vld [vmem:[%s6978_s1 + $0x5e8] ss:$16 sps:$4 sm:$0xff]  }
  0x74   :  { %1522 = vmatpush2.bf16.msra.mxu1 %v4835_v23  ;;  %1445 = vmatprep.subr.bf16.mxu0 %v4846_v25  ;;  %v4932_v23 = vld [vmem:[%s6978_s1 + $0x38c] ss:$16 sps:$4 sm:$0xff]  }
  0x75   :  { %1523 = vmatprep.subr.bf16.mxu1 %v4843_v27  ;;  %v4929_v25 = vld [vmem:[%s6978_s1 + $0x5cc] ss:$16 sps:$4 sm:$0xff]   ;;  %v4930_v27 = vld [vmem:[%s6978_s1 + $0x388] ss:$16 sps:$4 sm:$0xff]  }
  0x77   :  { %1446 = vmatpush2.bf16.msra.mxu0 %v4844_v28  ;;  %v4927_v28 = vld [vmem:[%s6978_s1 + $0x5c8] ss:$16 sps:$4 sm:$0xff]  }
  0x78   :  { %1524 = vmatpush2.bf16.msra.mxu1 %v4841_v29  ;;  %1447 = vmatprep.subr.bf16.mxu0 %v4852_v30  ;;  %v4938_v29 = vld [vmem:[%s6978_s1 + $0x36c] ss:$16 sps:$4 sm:$0xff]  }
  0x79   :  { %1525 = vmatprep.subr.bf16.mxu1 %v4849_v31  ;;  %v4935_v30 = vld [vmem:[%s6978_s1 + $0x5ac] ss:$16 sps:$4 sm:$0xff]   ;;  %v4936_v31 = vld [vmem:[%s6978_s1 + $0x368] ss:$16 sps:$4 sm:$0xff]  }
  0x7b   :  { %1448 = vmatpush2.bf16.msra.mxu0 %v4850_v32  ;;  %v4933_v32 = vld [vmem:[%s6978_s1 + $0x5a8] ss:$16 sps:$4 sm:$0xff]  }
  0x7c   :  { %1526 = vmatpush2.bf16.msra.mxu1 %v4847_v33  ;;  %1449 = vmatprep.subr.bf16.mxu0 %v4858_v34  ;;  %v4944_v33 = vld [vmem:[%s6978_s1 + $0x34c] ss:$16 sps:$4 sm:$0xff]  }
  0x7d   :  { %1527 = vmatprep.subr.bf16.mxu1 %v4855_v36  ;;  %v4941_v34 = vld [vmem:[%s6978_s1 + $0x58c] ss:$16 sps:$4 sm:$0xff]   ;;  %v4942_v36 = vld [vmem:[%s6978_s1 + $0x348] ss:$16 sps:$4 sm:$0xff]  }
  0x7f   :  { %1450 = vmatpush2.bf16.msra.mxu0 %v4856_v39  ;;  %v4950_v39 = vld [vmem:[%s6978_s1 + $0x32c] ss:$16 sps:$4 sm:$0xff]  }
  0x80   :  { %1528 = vmatpush2.bf16.msra.mxu1 %v4853_v40  ;;  %1542 = vmatprep.subr.bf16.mxu0 %v4866_v41  ;;  %v4947_v40 = vld [vmem:[%s6978_s1 + $0x56c] ss:$16 sps:$4 sm:$0xff]   ;;  %v4948_v41 = vld [vmem:[%s6978_s1 + $0x328] ss:$16 sps:$4 sm:$0xff]  }
  0x81   :  { %1529 = vmatprep.subr.bf16.mxu1 %v4863_v42  ;;  %v4945_v42 = vld [vmem:[%s6978_s1 + $0x568] ss:$16 sps:$4 sm:$0xff]  }
  0x82   :  { %1452 = vmatmul.mubr.bf16.vlgmr.msra.gmra.mxu0 %v5885_v43 }
  0x83   :  { %1543 = vmatpush1.bf16.msra.mxu0 %v4864_v44  ;;  %1574 = vmatprep.mubr.bf16.mxu0 %v5626_v9  ;;  %v4876_v9 = vld [vmem:[%s6978_s1 + $0x2a8] ss:$16 sps:$4 sm:$0xff]   ;;  %v4956_v44 = vld [vmem:[%s6978_s1 + $0x30c] ss:$16 sps:$4 sm:$0xff]  }
  0x84   :  { %1530 = vmatpush2.bf16.msra.mxu1 %v4861_v45  ;;  %1544 = vmatprep.subr.bf16.mxu0 %v4872_v47  ;;  %v4953_v45 = vld [vmem:[%s6978_s1 + $0x54c] ss:$16 sps:$4 sm:$0xff]   ;;  %v4954_v47 = vld [vmem:[%s6978_s1 + $0x308] ss:$16 sps:$4 sm:$0xff]  }
  0x85   :  { %1531 = vmatprep.subr.bf16.mxu1 %v4869_v48  ;;  %v4951_v48 = vld [vmem:[%s6978_s1 + $0x548] ss:$16 sps:$4 sm:$0xff]  }
  0x87   :  { %1545 = vmatpush1.bf16.msra.mxu0 %v4870_v49  ;;  %v4962_v49 = vld [vmem:[%s6978_s1 + $0x60c] ss:$16 sps:$4 sm:$0xff]  }
  0x88   :  { %1532 = vmatpush2.bf16.msra.mxu1 %v4867_v50  ;;  %1546 = vmatprep.subr.bf16.mxu0 %v4878_v51  ;;  %v4959_v50 = vld [vmem:[%s6978_s1 + $0x52c] ss:$16 sps:$4 sm:$0xff]   ;;  %v4960_v51 = vld [vmem:[%s6978_s1 + $0x608] ss:$16 sps:$4 sm:$0xff]  }
  0x89   :  { %1583 = vmatprep.subr.bf16.mxu1 %v4875_v53  ;;  %v4957_v53 = vld [vmem:[%s6978_s1 + $0x528] ss:$16 sps:$4 sm:$0xff]  }
  0x8b   :  { %1534 = vmatmul.mubr.bf16.vlgmr.msra.gmra.mxu1 %v5666_v24  ;;  %1547 = vmatpush1.bf16.msra.mxu0 %v4876_v9  ;;  %v4896_v24 = vld [vmem:[%s6978_s1 + $0x24c] ss:$16 sps:$4 sm:$0xff]  }
  0x8c   :  { %1584 = vmatpush1.bf16.msra.mxu1 %v4873_v54  ;;  %1548 = vmatprep.subr.bf16.mxu0 %v4884_v56  ;;  %v4966_v54 = vld [vmem:[%s6980_s3 + $0x78] sm:$0xff]  }
  0x8d   :  { %1585 = vmatprep.subr.bf16.mxu1 %v4881_v55  ;;  %1615 = vmatprep.mubr.bf16.mxu1 %v5784_v4  ;;  %v4900_v4 = vld [vmem:[%s6978_s1 + $0x228] ss:$16 sps:$4 sm:$0xff]   ;;  %v4965_v9 = vld [vmem:[%s6978_s1 + $0x50c] ss:$16 sps:$4 sm:$0xff]  }
  0x8e   :  { %v4963_v55 = vld [vmem:[%s6978_s1 + $0x508] ss:$16 sps:$4 sm:$0xff]  }
  0x8f   :  { %1549 = vmatpush1.bf16.msra.mxu0 %v4882_v57  ;;  %v4967_v56 = vld [vmem:[%s6980_s3 + $0x38] sm:$0xff]   ;;  %v4968_v57 = vld [vmem:[%s6980_s3 + $0x70] sm:$0xff]  }
  0x90   :  { %1586 = vmatpush1.bf16.msra.mxu1 %v4879_v58  ;;  %1550 = vmatprep.subr.bf16.mxu0 %v4890_v59  ;;  %v4970_v58 = vld [vmem:[%s6980_s3 + $0x68] sm:$0xff]  }
  0x91   :  { %1587 = vmatprep.subr.bf16.mxu1 %v4887_v60  ;;  %v4971_v59 = vld [vmem:[%s6980_s3 + $0x28] sm:$0xff]   ;;  %v4983_v60 = vld [vmem:[%s6980_s3 + $0xb8] sm:$0xff]  }
  0x93   :  { %1551 = vmatpush1.bf16.msra.mxu0 %v4888_v61  ;;  %v4984_v61 = vld [vmem:[%s6980_s3 + $0xf0] sm:$0xff]  }
  0x94   :  { %1588 = vmatpush1.bf16.msra.mxu1 %v4885_v62  ;;  %1552 = vmatprep.subr.bf16.mxu0 %v4896_v24  ;;  %v4973_v62 = vld [vmem:[%s6980_s3 + $0x20] sm:$0xff]   ;;  %v4974_v24 = vld [vmem:[%s6980_s3 + $0x58] sm:$0xff]  }
  0x95   :  { %1589 = vmatprep.subr.bf16.mxu1 %v4893_v63  ;;  %v4985_v63 = vld [vmem:[%s6980_s3 + $0xb0] sm:$0xff]  }
  0x97   :  { %1553 = vmatpush1.bf16.msra.mxu0 %v4894_v1  ;;  %v4975_v1 = vld [vmem:[%s6980_s3 + $0x18] sm:$0xff]  }
  0x98   :  { %1590 = vmatpush1.bf16.msra.mxu1 %v4891_v0  ;;  %1554 = vmatprep.subr.bf16.mxu0 %v4902_v3  ;;  %v4986_v0 = vld [vmem:[%s6980_s3 + $0xe8] sm:$0xff]  }
  0x99   :  { %1591 = vmatprep.subr.bf16.mxu1 %v4899_v2  ;;  %v4976_v2 = vld [vmem:[%s6980_s3 + $0x50] sm:$0xff]   ;;  %v4987_v3 = vld [vmem:[%s6980_s3 + $0xa8] sm:$0xff]  }
  0x9b   :  { %1555 = vmatpush1.bf16.msra.mxu0 %v4900_v4  ;;  %v4988_v4 = vld [vmem:[%s6980_s3 + $0xe0] sm:$0xff]  }
  0x9c   :  { %1592 = vmatpush1.bf16.msra.mxu1 %v4897_v5  ;;  %1556 = vmatprep.subr.bf16.mxu0 %v4908_v6  ;;  %v4977_v5 = vld [vmem:[%s6980_s3 + $0x10] sm:$0xff]   ;;  %v4978_v6 = vld [vmem:[%s6980_s3 + $0x48] sm:$0xff]  }
  0x9d   :  { %1593 = vmatprep.subr.bf16.mxu1 %v4905_v7  ;;  %v4979_v7 = vld [vmem:[%s6980_s3 + $0x8] sm:$0xff]  }
  0x9f   :  { %1557 = vmatpush1.bf16.msra.mxu0 %v4906_v8  ;;  %v4980_v8 = vld [vmem:[%s6980_s3 + $0x40] sm:$0xff]  }
  0xa0   :  { %1594 = vmatpush1.bf16.msra.mxu1 %v4903_v10  ;;  %1558 = vmatprep.subr.bf16.mxu0 %v4914_v11  ;;  %v4981_v10 = vld [vmem:[%s6980_s3] sm:$0xff]  }
  0xa1   :  { %1595 = vmatprep.subr.bf16.mxu1 %v4911_v12  ;;  %v4989_v12 = vld [vmem:[%s6980_s3 + $0xa0] sm:$0xff]  }
  0xa3   :  { %1559 = vmatpush2.bf16.msra.mxu0 %v4912_v13 }
  0xa4   :  { %1596 = vmatpush1.bf16.msra.mxu1 %v4909_v14  ;;  %1560 = vmatprep.subr.bf16.mxu0 %v4920_v15 }
  0xa5   :  { %1597 = vmatprep.subr.bf16.mxu1 %v4917_v16  ;;  %v4990_v16 = vld [vmem:[%s6980_s3 + $0xd8] sm:$0xff]  }
  0xa7   :  { %1561 = vmatpush2.bf16.msra.mxu0 %v4918_v17 }
  0xa8   :  { %1598 = vmatpush1.bf16.msra.mxu1 %v4915_v18  ;;  %1562 = vmatprep.subr.bf16.mxu0 %v4926_v19  ;;  %v4991_v18 = vld [vmem:[%s6980_s3 + $0x98] sm:$0xff]  }
  0xa9   :  { %1599 = vmatprep.subr.bf16.mxu1 %v4923_v20 }
  0xab   :  { %1563 = vmatpush2.bf16.msra.mxu0 %v4924_v21 }
  0xac   :  { %1600 = vmatpush2.bf16.msra.mxu1 %v4921_v22  ;;  %1564 = vmatprep.subr.bf16.mxu0 %v4932_v23  ;;  %v4992_v22 = vld [vmem:[%s6980_s3 + $0xd0] sm:$0xff]  }
  0xad   :  { %1601 = vmatprep.subr.bf16.mxu1 %v4929_v25  ;;  %v4993_v23 = vld [vmem:[%s6980_s3 + $0x90] sm:$0xff]  }
  0xaf   :  { %1565 = vmatpush2.bf16.msra.mxu0 %v4930_v27 }
  0xb0   :  { %1602 = vmatpush2.bf16.msra.mxu1 %v4927_v28  ;;  %1566 = vmatprep.subr.bf16.mxu0 %v4938_v29  ;;  %v4994_v28 = vld [vmem:[%s6980_s3 + $0xc8] sm:$0xff]  }
  0xb1   :  { %1603 = vmatprep.subr.bf16.mxu1 %v4935_v30  ;;  %v4995_v29 = vld [vmem:[%s6980_s3 + $0x88] sm:$0xff]  }
  0xb3   :  { %1567 = vmatpush2.bf16.msra.mxu0 %v4936_v31 }
  0xb4   :  { %1604 = vmatpush2.bf16.msra.mxu1 %v4933_v32  ;;  %1568 = vmatprep.subr.bf16.mxu0 %v4944_v33  ;;  %v4996_v32 = vld [vmem:[%s6980_s3 + $0xc0] sm:$0xff]  }
  0xb5   :  { %1605 = vmatprep.subr.bf16.mxu1 %v4941_v34  ;;  %v4997_v33 = vld [vmem:[%s6980_s3 + $0x80] sm:$0xff]   ;;  %v6197_v34 = vsub.s32 0, %v5561_v46 }
  0xb7   :  { %1569 = vmatpush2.bf16.msra.mxu0 %v4942_v36  ;;  %v331_v36 = vld [vmem:[%s6979_s2] sm:$0xf] }
  0xb8   :  { %1606 = vmatpush2.bf16.msra.mxu1 %v4939_v37  ;;  %1570 = vmatprep.subr.bf16.mxu0 %v4950_v39  ;;  %v6203_v37 = vsub.s32 1, %v5561_v46  ;;  %v336_v39 = vrot.slane %v331_v36, %v6197_v34 }
  0xb9   :  { %1607 = vmatprep.subr.bf16.mxu1 %v4947_v40 }
  0xba   :  { %v340_v40 = vrot.slane %v331_v36, %v6203_v37 }
  0xbb   :  { %1571 = vmatpush2.bf16.msra.mxu0 %v4948_v41 }
  0xbc   :  { %1608 = vmatpush2.bf16.msra.mxu1 %v4945_v42  ;;  %1572 = vmatprep.subr.bf16.mxu0 %v4956_v44 }
  0xbd   :  { %1609 = vmatprep.subr.bf16.mxu1 %v4953_v45 }
  0xbf   :  { %1573 = vmatpush2.bf16.msra.mxu0 %v4954_v47 }
  0xc0   :  { %1610 = vmatpush2.bf16.msra.mxu1 %v4951_v48  ;;  %1638 = vmatprep.subr.bf16.mxu0 %v4962_v49 }
  0xc1   :  { %1611 = vmatprep.subr.bf16.mxu1 %v4959_v50 }
  0xc2   :  { %1575 = vmatmul.mubr.bf16.vlgmr.msra.gmra.mxu0 %v5671_v26  ;;  %v4969_v26 = vld [vmem:[%s6980_s3 + $0x30] sm:$0xff]  }
  0xc3   :  { %1639 = vmatpush1.bf16.msra.mxu0 %v4960_v51  ;;  %1656 = vmatprep.mubr.bf16.mxu0 %v5381_v35 }
  0xc4   :  { %1612 = vmatpush2.bf16.msra.mxu1 %v4957_v53  ;;  %4567 = vmatprep.subr.bf16.mxu0 %v4966_v54 }
  0xc5   :  { %1613 = vmatprep.subr.bf16.mxu1 %v4965_v9 }
  0xc8   :  { %1614 = vmatpush2.bf16.msra.mxu1 %v4963_v55 }
  0xca   :  { %4299 = vmatmul.mubr.msk.bf16.vlgmr.msra.gmra.mxu0 %vm1333_vm0, %v5699_v38  ;;  %v4972_v38 = vld [vmem:[%s6980_s3 + $0x60] sm:$0xff]  }
  0xcb   :  { %1616 = vmatmul.mubr.bf16.vlgmr.msra.gmra.mxu1 %v5885_v43  ;;  %4568 = vmatpush3.bf16.msra.mxu0 %v4967_v56  ;;  %v4982_v43 = vld [vmem:[%s6980_s3 + $0xf8] sm:$0xff]  }
  0xcc   :  { %4569 = vmatprep.subr.bf16.mxu0 %v4968_v57  ;;  %4589 = vmatprep.subr.bf16.mxu1 %v4982_v43 }
  0xcd   :  { %4590 = vmatpush3.bf16.msra.mxu1 %v4983_v60  ;;  %v6209_v60 = vsub.s32 2, %v5561_v46 }
  0xce   :  { %4591 = vmatprep.subr.bf16.mxu1 %v4984_v61  ;;  %v6212_v61 = vsub.s32 3, %v5561_v46 }
  0xcf   :  { %4570 = vmatpush3.bf16.msra.mxu0 %v4969_v26 }
  0xd0   :  { %4571 = vmatprep.subr.bf16.mxu0 %v4970_v58 }
  0xd1   :  { %4592 = vmatpush3.bf16.msra.mxu1 %v4985_v63 }
  0xd2   :  { %4593 = vmatprep.subr.bf16.mxu1 %v4986_v0  ;;  %v348_v0 = vrot.slane %v331_v36, %v6212_v61 }
  0xd3   :  { %4572 = vmatpush3.bf16.msra.mxu0 %v4971_v59 }
  0xd4   :  { %4573 = vmatprep.subr.bf16.mxu0 %v4972_v38 }
  0xd5   :  { %4594 = vmatpush3.bf16.msra.mxu1 %v4987_v3 }
  0xd6   :  { %4595 = vmatprep.subr.bf16.mxu1 %v4988_v4 }
  0xd7   :  { %4574 = vmatpush3.bf16.msra.mxu0 %v4973_v62 }
  0xd8   :  { %4575 = vmatprep.subr.bf16.mxu0 %v4974_v24  ;;  %v344_v24 = vrot.slane %v331_v36, %v6209_v60  ;;  %v5015_v36 = vld [vmem:[%s6984_s7 + $0x50c] ss:$28 sps:$4 sm:$0xff]  }
  0xd9   :  { %4596 = vmatpush3.bf16.msra.mxu1 %v4989_v12 }
  0xda   :  { %4597 = vmatprep.subr.bf16.mxu1 %v4990_v16 }
  0xdb   :  { %4576 = vmatpush3.bf16.msra.mxu0 %v4975_v1 }
  0xdc   :  { %4577 = vmatprep.subr.bf16.mxu0 %v4976_v2 }
  0xdd   :  { %4598 = vmatpush3.bf16.msra.mxu1 %v4991_v18 }
  0xde   :  { %4599 = vmatprep.subr.bf16.mxu1 %v4992_v22 }
  0xdf   :  { %4578 = vmatpush3.bf16.msra.mxu0 %v4977_v5 }
  0xe0   :  { %4579 = vmatprep.subr.bf16.mxu0 %v4978_v6 }
  0xe1   :  { %4600 = vmatpush3.bf16.msra.mxu1 %v4993_v23 }
  0xe2   :  { %4601 = vmatprep.subr.bf16.mxu1 %v4994_v28  ;;  %v4998_v28 = vld [vmem:[%s6982_s5 + $0x20] ss:$16 sps:$4 sm:$0xff]  }
  0xe3   :  { %4580 = vmatpush3.bf16.msra.mxu0 %v4979_v7 }
  0xe4   :  { %4581 = vmatprep.subr.bf16.mxu0 %v4980_v8 }
  0xe5   :  { %4602 = vmatpush3.bf16.msra.mxu1 %v4995_v29  ;;  %v5001_v29 = vld [vmem:[%s6982_s5 + $0x28] ss:$16 sps:$4 sm:$0xff]  }
  0xe6   :  { %4603 = vmatprep.subr.bf16.mxu1 %v4996_v32  ;;  %v5007_v32 = vld [vmem:[%s6982_s5 + $0x8] ss:$16 sps:$4 sm:$0xff]  }
  0xe7   :  { %4582 = vmatpush3.bf16.msra.mxu0 %v4981_v10 }
  0xe9   :  { %4604 = vmatpush3.bf16.msra.mxu1 %v4997_v33  ;;  %v5012_v33 = vld [vmem:[%s6984_s7 + $0x18c] ss:$28 sps:$4 sm:$0xff]  }
 0x102   :  { %v1371_v11 = vpop.f32.mrf.mxu0 }
 0x103   :  { %v1412_v13 = vpop.f32.mrf.mxu1  ;;  %v1372_v41 = vadd.f32 %v1371_v11, %v336_v39 }
 0x104   :  { %v1373_v14 = vpop.f32.mrf.mxu0 }
 0x105   :  { %v1414_v15 = vpop.f32.mrf.mxu1  ;;  %v1374_v42 = vadd.f32 %v1373_v14, %v340_v40  ;;  %v1413_v44 = vadd.f32 %v1412_v13, %v1372_v41 }
 0x106   :  { %v1375_v17 = vpop.f32.mrf.mxu0 }
 0x107   :  { %v1416_v19 = vpop.f32.mrf.mxu1  ;;  %v1415_v47 = vadd.f32 %v1414_v15, %v1374_v42 }
 0x108   :  { %v1376_v20 = vpop.f32.mrf.mxu0 }
 0x109   :  { %v1417_v21 = vpop.f32.mrf.mxu1 }
 0x10b   :  { %v1494_v25 = vpop.f32.mrf.mxu1 }
 0x10d   :  { %v1496_v27 = vpop.f32.mrf.mxu1 }
 0x10f   :  { %v1498_v30 = vpop.f32.mrf.mxu1 }
 0x110   :  { %v5009_v30 = vld [vmem:[%s6982_s5 + $0xc] ss:$16 sps:$4 sm:$0xff]  }
 0x111   :  { %v1499_v31 = vpop.f32.mrf.mxu1 }
 0x112   :  { %v5004_v31 = vld [vmem:[%s6982_s5] ss:$16 sps:$4 sm:$0xff]  }
 0x142   :  { %v1453_v45 = vpop.f32.mrf.mxu0 }
 0x143   :  { %v1454_v48 = vadd.f32 %v1453_v45, %v1413_v44  ;;  %v4300_v45 = vld [vmem:[%s6981_s4] ss:$0 sm:$0xff] }
 0x144   :  { %v1455_v49 = vpop.f32.mrf.mxu0 }
 0x145   :  { %v1495_v50 = vadd.f32 %v1494_v25, %v1454_v48  ;;  %v1456_v51 = vadd.f32 %v1455_v49, %v1415_v47  ;;  %v5000_v25 = vld [vmem:[%s6982_s5 + $0x24] ss:$16 sps:$4 sm:$0xff]  }
 0x146   :  { %v1457_v53 = vpop.f32.mrf.mxu0  ;;  %2103 = vmatprep.subr.bf16.mxu0 %v5000_v25  ;;  %v5066_v25 = vld [vmem:[%s6984_s7 + $0x314] ss:$28 sps:$4 sm:$0xff]  }
 0x147   :  { %v1497_v54 = vadd.f32 %v1496_v27, %v1456_v51  ;;  %v1665_v9 = vmax.f32 %v1495_v50, 0.0  ;;  %v5003_v27 = vld [vmem:[%s6982_s5 + $0x2c] ss:$16 sps:$4 sm:$0xff]  }
 0x148   :  { %v1458_v55 = vpop.f32.mrf.mxu0  ;;  %2144 = vmatprep.subr.bf16.mxu1 %v5003_v27  ;;  %v5069_v27 = vld [vmem:[%s6984_s7 + $0x694] ss:$28 sps:$4 sm:$0xff]  }
 0x149   :  { %v1666_v56 = vmax.f32 %v1497_v54, 0.0  ;;  %v1669_v58 = vpack.c.bf16 %v1665_v9, %v1665_v9  ;;  %v5010_v9 = vld [vmem:[%s6984_s7 + $0x188] ss:$28 sps:$4 sm:$0xff]  }
 0x14a   :  { %v5013_v55 = vld [vmem:[%s6984_s7 + $0x508] ss:$28 sps:$4 sm:$0xff]  }
 0x14b   :  { %v1670_v57 = vpack.c.bf16 %v1666_v56, %v1666_v56  ;;  %v1535_v26 = vpop.f32.mrf.mxu1 }
 0x14c   :  { %v1536_v2 = vadd.f32 %v1535_v26, %v344_v24  ;;  %v5021_v26 = vld [vmem:[%s6984_s7 + $0x4d4] ss:$28 sps:$4 sm:$0xff]  }
 0x14d   :  { %v1537_v59 = vpop.f32.mrf.mxu1  ;;  %1968 = vmatprep.mubr.bf16.mxu0 %v1670_v57  ;;  %v5018_v57 = vld [vmem:[%s6984_s7 + $0x154] ss:$28 sps:$4 sm:$0xff]  }
 0x14e   :  { %1969 = vmatmul.mubr.bf16.vlgmr.msra.gmra.mxu0 %v1669_v58  ;;  %v1538_v4 = vadd.f32 %v1537_v59, %v348_v0  ;;  %v5016_v58 = vld [vmem:[%s6984_s7 + $0x150] ss:$28 sps:$4 sm:$0xff]   ;;  %v5025_v24 = vld [vmem:[%s6984_s7 + $0x498] ss:$28 sps:$4 sm:$0xff]   ;;  %v5033_v0 = vld [vmem:[%s6984_s7 + $0x464] ss:$28 sps:$4 sm:$0xff]  }
 0x14f   :  { %v1539_v38 = vpop.f32.mrf.mxu1  ;;  %2123 = vmatprep.mubr.bf16.mxu0 %v5381_v35  ;;  %2104 = vmatpush1.bf16.msra.mxu0 %v4998_v28  ;;  %v5019_v59 = vld [vmem:[%s6984_s7 + $0x4d0] ss:$28 sps:$4 sm:$0xff]  }
 0x150   :  { %v5024_v38 = vld [vmem:[%s6984_s7 + $0x11c] ss:$28 sps:$4 sm:$0xff]   ;;  %v5064_v28 = vld [vmem:[%s6984_s7 + $0x310] ss:$28 sps:$4 sm:$0xff]  }
 0x151   :  { %v1540_v43 = vpop.f32.mrf.mxu1 }
 0x152   :  { %v5027_v43 = vld [vmem:[%s6984_s7 + $0x49c] ss:$28 sps:$4 sm:$0xff]  }
 0x182   :  { %v1576_v62 = vpop.f32.mrf.mxu0 }
 0x183   :  { %v1577_v5 = vadd.f32 %v1576_v62, %v1536_v2  ;;  %v5022_v62 = vld [vmem:[%s6984_s7 + $0x118] ss:$28 sps:$4 sm:$0xff]   ;;  %v5031_v2 = vld [vmem:[%s6984_s7 + $0x460] ss:$28 sps:$4 sm:$0xff]  }
 0x184   :  { %v1578_v63 = vpop.f32.mrf.mxu0 }
 0x185   :  { %v1579_v8 = vadd.f32 %v1578_v63, %v1538_v4  ;;  %v5030_v63 = vld [vmem:[%s6984_s7 + $0xe4] ss:$28 sps:$4 sm:$0xff]   ;;  %v5039_v4 = vld [vmem:[%s6984_s7 + $0x42c] ss:$28 sps:$4 sm:$0xff]  }
 0x186   :  { %v1580_v1 = vpop.f32.mrf.mxu0 }
 0x187   :  { %v5028_v1 = vld [vmem:[%s6984_s7 + $0xe0] ss:$28 sps:$4 sm:$0xff]  }
 0x188   :  { %v1581_v3 = vpop.f32.mrf.mxu0 }
 0x189   :  { %v5036_v3 = vld [vmem:[%s6984_s7 + $0xac] ss:$28 sps:$4 sm:$0xff]  }
 0x18a   :  { %v1658_v6 = vpop.f32.mrf.mxu0 }
 0x18b   :  { %v1617_v7 = vpop.f32.mrf.mxu1 }
 0x18c   :  { %v1618_v10 = vadd.f32 %v1617_v7, %v1577_v5  ;;  %v1660_v11 = vpop.f32.mrf.mxu0  ;;  %v5034_v5 = vld [vmem:[%s6984_s7 + $0xa8] ss:$28 sps:$4 sm:$0xff]   ;;  %v5042_v7 = vld [vmem:[%s6984_s7 + $0x74] ss:$28 sps:$4 sm:$0xff]  }
 0x18d   :  { %v1619_v12 = vpop.f32.mrf.mxu1 }
 0x18e   :  { %v1659_v13 = vadd.f32 %v1658_v6, %v1618_v10  ;;  %v1620_v14 = vadd.f32 %v1619_v12, %v1579_v8  ;;  %v1662_v15 = vpop.f32.mrf.mxu0  ;;  %v5037_v6 = vld [vmem:[%s6984_s7 + $0x428] ss:$28 sps:$4 sm:$0xff]   ;;  %v5045_v8 = vld [vmem:[%s6984_s7 + $0x3f4] ss:$28 sps:$4 sm:$0xff]   ;;  %v5048_v12 = vld [vmem:[%s6984_s7 + $0x3c] ss:$28 sps:$4 sm:$0xff]  }
 0x18f   :  { %v1621_v16 = vpop.f32.mrf.mxu1  ;;  %v5040_v10 = vld [vmem:[%s6984_s7 + $0x70] ss:$28 sps:$4 sm:$0xff]   ;;  %v5049_v15 = vld [vmem:[%s6984_s7 + $0x3b8] ss:$28 sps:$4 sm:$0xff]  }
 0x190   :  { %v1661_v17 = vadd.f32 %v1660_v11, %v1620_v14  ;;  %v1663_v18 = vpop.f32.mrf.mxu0  ;;  %v1667_v19 = vmax.f32 %v1659_v13, 0.0  ;;  %v5043_v11 = vld [vmem:[%s6984_s7 + $0x3f0] ss:$28 sps:$4 sm:$0xff]   ;;  %v5051_v13 = vld [vmem:[%s6984_s7 + $0x3bc] ss:$28 sps:$4 sm:$0xff]  }
 0x191   :  { %v1622_v20 = vpop.f32.mrf.mxu1  ;;  %v5046_v14 = vld [vmem:[%s6984_s7 + $0x38] ss:$28 sps:$4 sm:$0xff]   ;;  %v5054_v16 = vld [vmem:[%s6984_s7 + $0x4] ss:$28 sps:$4 sm:$0xff]  }
 0x192   :  { %v1668_v21 = vmax.f32 %v1661_v17, 0.0  ;;  %v1671_v23 = vpack.c.bf16 %v1667_v19, %v1667_v19  ;;  %v5057_v17 = vld [vmem:[%s6984_s7 + $0x384] ss:$28 sps:$4 sm:$0xff]   ;;  %v5060_v20 = vld [vmem:[%s6984_s7 + $0x34c] ss:$28 sps:$4 sm:$0xff]  }
 0x193   :  { %v5052_v18 = vld [vmem:[%s6984_s7] ss:$28 sps:$4 sm:$0xff]  }
 0x194   :  { %v1672_v22 = vpack.c.bf16 %v1668_v21, %v1668_v21  ;;  %v5055_v19 = vld [vmem:[%s6984_s7 + $0x380] ss:$28 sps:$4 sm:$0xff]   ;;  %v5063_v21 = vld [vmem:[%s6984_s7 + $0x6cc] ss:$28 sps:$4 sm:$0xff]  }
 0x196   :  { %2008 = vmatprep.mubr.bf16.mxu1 %v1672_v22  ;;  %v5058_v22 = vld [vmem:[%s6984_s7 + $0x348] ss:$28 sps:$4 sm:$0xff]  }
 0x197   :  { %2009 = vmatmul.mubr.bf16.vlgmr.msra.gmra.mxu1 %v1671_v23  ;;  %v5061_v23 = vld [vmem:[%s6984_s7 + $0x6c8] ss:$28 sps:$4 sm:$0xff]  }
 0x198   :  { %2164 = vmatprep.mubr.bf16.mxu1 %v5381_v35  ;;  %2145 = vmatpush1.bf16.msra.mxu1 %v5001_v29  ;;  %v5006_v35 = vld [vmem:[%s6982_s5 + $0x4] ss:$16 sps:$4 sm:$0xff]   ;;  %v5067_v29 = vld [vmem:[%s6984_s7 + $0x690] ss:$28 sps:$4 sm:$0xff]  }
 0x199   :  { %2105 = vmatprep.subr.bf16.mxu0 %v5006_v35  ;;  %2146 = vmatprep.subr.bf16.mxu1 %v5009_v30  ;;  %v5072_v35 = vld [vmem:[%s6984_s7 + $0x2dc] ss:$28 sps:$4 sm:$0xff]  }
 0x19a   :  { %2106 = vmatpush1.bf16.msra.mxu0 %v5004_v31  ;;  %v5075_v30 = vld [vmem:[%s6984_s7 + $0x65c] ss:$28 sps:$4 sm:$0xff]  }
 0x19b   :  { %3626 = vmatprep.subr.bf16.mxu0 %v5012_v33  ;;  %v5070_v31 = vld [vmem:[%s6984_s7 + $0x2d8] ss:$28 sps:$4 sm:$0xff]   ;;  %v5078_v33 = vld [vmem:[%s6984_s7 + $0x2a4] ss:$28 sps:$4 sm:$0xff]  }
 0x19c   :  { %2147 = vmatpush1.bf16.msra.mxu1 %v5007_v32  ;;  %v5073_v32 = vld [vmem:[%s6984_s7 + $0x658] ss:$28 sps:$4 sm:$0xff]  }
 0x19d   :  { %3667 = vmatprep.subr.bf16.mxu1 %v5015_v36  ;;  %v5081_v36 = vld [vmem:[%s6984_s7 + $0x624] ss:$28 sps:$4 sm:$0xff]  }
 0x20e   :  { %v4583_v39 = vpop.f32.mrf.mxu0 }
 0x210   :  { %v4584_v40 = vpop.f32.mrf.mxu0 }
 0x211   :  { %v4585_v41 = vadd.f32 %v4584_v40, %v4583_v39  ;;  %v5076_v39 = vld [vmem:[%s6984_s7 + $0x2a0] ss:$28 sps:$4 sm:$0xff]  }
 0x212   :  { %v4586_v42 = vpop.f32.mrf.mxu0  ;;  %v5079_v40 = vld [vmem:[%s6984_s7 + $0x620] ss:$28 sps:$4 sm:$0xff]  }
 0x213   :  { %v1971_v49 = vadd.f32 %v4585_v41, %v4300_v45  ;;  %v5084_v41 = vld [vmem:[%s6984_s7 + $0x26c] ss:$28 sps:$4 sm:$0xff]  }
 0x214   :  { %v4587_v44 = vpop.f32.mrf.mxu0  ;;  %v5087_v42 = vld [vmem:[%s6984_s7 + $0x5ec] ss:$28 sps:$4 sm:$0xff]  }
 0x215   :  { %v5082_v44 = vld [vmem:[%s6984_s7 + $0x268] ss:$28 sps:$4 sm:$0xff]  }
 0x216   :  { %v5085_v45 = vld [vmem:[%s6984_s7 + $0x5e8] ss:$28 sps:$4 sm:$0xff]  }
 0x257   :  { %v4605_v47 = vpop.f32.mrf.mxu1 }
 0x259   :  { %v4606_v48 = vpop.f32.mrf.mxu1 }
 0x25a   :  { %v4607_v50 = vadd.f32 %v4606_v48, %v4605_v47  ;;  %v5090_v47 = vld [vmem:[%s6984_s7 + $0x234] ss:$28 sps:$4 sm:$0xff]  }
 0x25b   :  { %v4608_v51 = vpop.f32.mrf.mxu1  ;;  %v5093_v48 = vld [vmem:[%s6984_s7 + $0x5b4] ss:$28 sps:$4 sm:$0xff]  }
 0x25c   :  { %v2011_v53 = vadd.f32 %v4607_v50, %v1971_v49  ;;  %v5088_v49 = vld [vmem:[%s6984_s7 + $0x230] ss:$28 sps:$4 sm:$0xff]   ;;  %v5096_v51 = vld [vmem:[%s6984_s7 + $0x1fc] ss:$28 sps:$4 sm:$0xff]  }
 0x25d   :  { %v4609_v54 = vpop.f32.mrf.mxu1  ;;  %v5091_v50 = vld [vmem:[%s6984_s7 + $0x5b0] ss:$28 sps:$4 sm:$0xff]  }
 0x25e   :  { %v2016_v56 = vpack.c.bf16 %v2011_v53, %v2011_v53  ;;  %v5099_v53 = vld [vmem:[%s6984_s7 + $0x57c] ss:$28 sps:$4 sm:$0xff]  }
 0x25f   :  { %v5094_v54 = vld [vmem:[%s6984_s7 + $0x1f8] ss:$28 sps:$4 sm:$0xff]  }
 0x260   :  { %4341 = vmatmul.mubr.msk.bf16.vlgmr.msra.gmra.mxu0 %vm2087_vm1, %v2016_v56  ;;  %4342 = vmatmul.mubr.msk.bf16.vlgmr.msra.gmra.mxu1 %vm2087_vm1, %v2016_v56  ;;  %v5105_v56 = vld [vmem:[%s6984_s7 + $0x544] ss:$28 sps:$4 sm:$0xff]  }
 0x261   :  { %3627 = vmatpush1.bf16.msra.mxu0 %v5010_v9  ;;  %3668 = vmatpush1.bf16.msra.mxu1 %v5013_v55  ;;  %v5097_v9 = vld [vmem:[%s6984_s7 + $0x578] ss:$28 sps:$4 sm:$0xff]   ;;  %v5102_v55 = vld [vmem:[%s6984_s7 + $0x1c4] ss:$28 sps:$4 sm:$0xff]  }
 0x262   :  { %3628 = vmatprep.subr.bf16.mxu0 %v5018_v57  ;;  %3669 = vmatprep.subr.bf16.mxu1 %v5021_v26  ;;  %v5100_v57 = vld [vmem:[%s6984_s7 + $0x1c0] ss:$28 sps:$4 sm:$0xff]  }
 0x263   :  { %v5103_v26 = vld [vmem:[%s6984_s7 + $0x540] ss:$28 sps:$4 sm:$0xff]  }
 0x265   :  { %3629 = vmatpush1.bf16.msra.mxu0 %v5016_v58  ;;  %3670 = vmatpush1.bf16.msra.mxu1 %v5019_v59  ;;  %v5108_v58 = vld [vmem:[%s6984_s7 + $0x194] ss:$28 sps:$4 sm:$0xff]  }
 0x266   :  { %3630 = vmatprep.subr.bf16.mxu0 %v5024_v38  ;;  %3671 = vmatprep.subr.bf16.mxu1 %v5027_v43  ;;  %v5111_v59 = vld [vmem:[%s6984_s7 + $0x514] ss:$28 sps:$4 sm:$0xff]   ;;  %v2025_v38 = vld [vmem:[%s6983_s6] sm:$0xf] }
 0x267   :  { %v2030_v43 = vrot.slane %v2025_v38, %v6197_v34 }
 0x269   :  { %3631 = vmatpush1.bf16.msra.mxu0 %v5022_v62  ;;  %3672 = vmatpush1.bf16.msra.mxu1 %v5025_v24  ;;  %v2038_v62 = vrot.slane %v2025_v38, %v6209_v60  ;;  %v2034_v24 = vrot.slane %v2025_v38, %v6203_v37 }
 0x26a   :  { %3632 = vmatprep.subr.bf16.mxu0 %v5030_v63  ;;  %3673 = vmatprep.subr.bf16.mxu1 %v5033_v0  ;;  %v2042_v63 = vrot.slane %v2025_v38, %v6212_v61  ;;  %v5157_v38 = vld [vmem:[%s6984_s7 + $0x6d0] ss:$28 sps:$4 sm:$0xff]  }
 0x26d   :  { %3633 = vmatpush1.bf16.msra.mxu0 %v5028_v1  ;;  %3674 = vmatpush1.bf16.msra.mxu1 %v5031_v2 }
 0x26e   :  { %3634 = vmatprep.subr.bf16.mxu0 %v5036_v3  ;;  %3675 = vmatprep.subr.bf16.mxu1 %v5039_v4 }
 0x271   :  { %3635 = vmatpush1.bf16.msra.mxu0 %v5034_v5  ;;  %3676 = vmatpush1.bf16.msra.mxu1 %v5037_v6 }
 0x272   :  { %3636 = vmatprep.subr.bf16.mxu0 %v5042_v7  ;;  %3677 = vmatprep.subr.bf16.mxu1 %v5045_v8 }
 0x275   :  { %3637 = vmatpush1.bf16.msra.mxu0 %v5040_v10  ;;  %3678 = vmatpush1.bf16.msra.mxu1 %v5043_v11 }
 0x276   :  { %3638 = vmatprep.subr.bf16.mxu0 %v5048_v12  ;;  %3679 = vmatprep.subr.bf16.mxu1 %v5051_v13 }
 0x279   :  { %3639 = vmatpush1.bf16.msra.mxu0 %v5046_v14  ;;  %3680 = vmatpush1.bf16.msra.mxu1 %v5049_v15 }
 0x27a   :  { %3640 = vmatprep.subr.bf16.mxu0 %v5054_v16  ;;  %3681 = vmatprep.subr.bf16.mxu1 %v5057_v17 }
 0x27d   :  { %3641 = vmatpush1.bf16.msra.mxu0 %v5052_v18  ;;  %3682 = vmatpush1.bf16.msra.mxu1 %v5055_v19  ;;  %v5106_v19 = vld [vmem:[%s6984_s7 + $0x190] ss:$28 sps:$4 sm:$0xff]  }
 0x27e   :  { %3642 = vmatprep.subr.bf16.mxu0 %v5060_v20  ;;  %3683 = vmatprep.subr.bf16.mxu1 %v5063_v21  ;;  %v5109_v20 = vld [vmem:[%s6984_s7 + $0x510] ss:$28 sps:$4 sm:$0xff]  }
 0x281   :  { %3643 = vmatpush2.bf16.msra.mxu0 %v5058_v22  ;;  %3684 = vmatpush2.bf16.msra.mxu1 %v5061_v23  ;;  %v5114_v23 = vld [vmem:[%s6984_s7 + $0x15c] ss:$28 sps:$4 sm:$0xff]  }
 0x282   :  { %3644 = vmatprep.subr.bf16.mxu0 %v5066_v25  ;;  %3685 = vmatprep.subr.bf16.mxu1 %v5069_v27  ;;  %v5117_v25 = vld [vmem:[%s6984_s7 + $0x4dc] ss:$28 sps:$4 sm:$0xff]  }
 0x283   :  { %v5112_v27 = vld [vmem:[%s6984_s7 + $0x158] ss:$28 sps:$4 sm:$0xff]  }
 0x285   :  { %3645 = vmatpush2.bf16.msra.mxu0 %v5064_v28  ;;  %3686 = vmatpush2.bf16.msra.mxu1 %v5067_v29  ;;  %v5115_v28 = vld [vmem:[%s6984_s7 + $0x4d8] ss:$28 sps:$4 sm:$0xff]   ;;  %v5120_v29 = vld [vmem:[%s6984_s7 + $0x124] ss:$28 sps:$4 sm:$0xff]  }
 0x286   :  { %3646 = vmatprep.subr.bf16.mxu0 %v5072_v35  ;;  %3687 = vmatprep.subr.bf16.mxu1 %v5075_v30  ;;  %v5123_v35 = vld [vmem:[%s6984_s7 + $0x4a4] ss:$28 sps:$4 sm:$0xff]  }
 0x287   :  { %v5118_v30 = vld [vmem:[%s6984_s7 + $0x120] ss:$28 sps:$4 sm:$0xff]  }
 0x289   :  { %3647 = vmatpush2.bf16.msra.mxu0 %v5070_v31  ;;  %3688 = vmatpush2.bf16.msra.mxu1 %v5073_v32  ;;  %v5121_v31 = vld [vmem:[%s6984_s7 + $0x4a0] ss:$28 sps:$4 sm:$0xff]   ;;  %v5126_v32 = vld [vmem:[%s6984_s7 + $0xec] ss:$28 sps:$4 sm:$0xff]  }
 0x28a   :  { %3648 = vmatprep.subr.bf16.mxu0 %v5078_v33  ;;  %3689 = vmatprep.subr.bf16.mxu1 %v5081_v36  ;;  %v5129_v33 = vld [vmem:[%s6984_s7 + $0x46c] ss:$28 sps:$4 sm:$0xff]  }
 0x28b   :  { %v5124_v36 = vld [vmem:[%s6984_s7 + $0xe8] ss:$28 sps:$4 sm:$0xff]  }
 0x28d   :  { %3649 = vmatpush2.bf16.msra.mxu0 %v5076_v39  ;;  %3690 = vmatpush2.bf16.msra.mxu1 %v5079_v40  ;;  %v5127_v39 = vld [vmem:[%s6984_s7 + $0x468] ss:$28 sps:$4 sm:$0xff]   ;;  %v5132_v40 = vld [vmem:[%s6984_s7 + $0xb4] ss:$28 sps:$4 sm:$0xff]  }
 0x28e   :  { %3650 = vmatprep.subr.bf16.mxu0 %v5084_v41  ;;  %3691 = vmatprep.subr.bf16.mxu1 %v5087_v42  ;;  %v5135_v41 = vld [vmem:[%s6984_s7 + $0x434] ss:$28 sps:$4 sm:$0xff]  }
 0x28f   :  { %v5130_v42 = vld [vmem:[%s6984_s7 + $0xb0] ss:$28 sps:$4 sm:$0xff]  }
 0x291   :  { %3651 = vmatpush2.bf16.msra.mxu0 %v5082_v44  ;;  %3692 = vmatpush2.bf16.msra.mxu1 %v5085_v45  ;;  %v5133_v44 = vld [vmem:[%s6984_s7 + $0x430] ss:$28 sps:$4 sm:$0xff]   ;;  %v5138_v45 = vld [vmem:[%s6984_s7 + $0x7c] ss:$28 sps:$4 sm:$0xff]  }
 0x292   :  { %3652 = vmatprep.subr.bf16.mxu0 %v5090_v47  ;;  %3693 = vmatprep.subr.bf16.mxu1 %v5093_v48  ;;  %v5141_v47 = vld [vmem:[%s6984_s7 + $0x3fc] ss:$28 sps:$4 sm:$0xff]  }
 0x293   :  { %v5136_v48 = vld [vmem:[%s6984_s7 + $0x78] ss:$28 sps:$4 sm:$0xff]  }
 0x295   :  { %3653 = vmatpush2.bf16.msra.mxu0 %v5088_v49  ;;  %3694 = vmatpush2.bf16.msra.mxu1 %v5091_v50  ;;  %v5139_v49 = vld [vmem:[%s6984_s7 + $0x3f8] ss:$28 sps:$4 sm:$0xff]   ;;  %v5144_v50 = vld [vmem:[%s6984_s7 + $0x44] ss:$28 sps:$4 sm:$0xff]  }
 0x296   :  { %3654 = vmatprep.subr.bf16.mxu0 %v5096_v51  ;;  %3695 = vmatprep.subr.bf16.mxu1 %v5099_v53  ;;  %v5147_v51 = vld [vmem:[%s6984_s7 + $0x3c4] ss:$28 sps:$4 sm:$0xff]  }
 0x297   :  { %v5142_v53 = vld [vmem:[%s6984_s7 + $0x40] ss:$28 sps:$4 sm:$0xff]  }
 0x299   :  { %3655 = vmatpush2.bf16.msra.mxu0 %v5094_v54  ;;  %3696 = vmatpush2.bf16.msra.mxu1 %v5097_v9  ;;  %v5145_v54 = vld [vmem:[%s6984_s7 + $0x3c0] ss:$28 sps:$4 sm:$0xff]   ;;  %v5150_v9 = vld [vmem:[%s6984_s7 + $0xc] ss:$28 sps:$4 sm:$0xff]  }
 0x29a   :  { %3656 = vmatprep.subr.bf16.mxu0 %v5102_v55  ;;  %3697 = vmatprep.subr.bf16.mxu1 %v5105_v56  ;;  %v5153_v55 = vld [vmem:[%s6984_s7 + $0x38c] ss:$28 sps:$4 sm:$0xff]  }
 0x29b   :  { %v5148_v56 = vld [vmem:[%s6984_s7 + $0x8] ss:$28 sps:$4 sm:$0xff]  }
 0x29d   :  { %3657 = vmatpush2.bf16.msra.mxu0 %v5100_v57  ;;  %3698 = vmatpush2.bf16.msra.mxu1 %v5103_v26  ;;  %v5151_v57 = vld [vmem:[%s6984_s7 + $0x388] ss:$28 sps:$4 sm:$0xff]   ;;  %v5156_v26 = vld [vmem:[%s6984_s7 + $0x354] ss:$28 sps:$4 sm:$0xff]  }
 0x29e   :  { %3708 = vmatprep.subr.bf16.mxu0 %v5108_v58  ;;  %3749 = vmatprep.subr.bf16.mxu1 %v5111_v59  ;;  %v5159_v58 = vld [vmem:[%s6984_s7 + $0x6d4] ss:$28 sps:$4 sm:$0xff]  }
 0x29f   :  { %v5154_v59 = vld [vmem:[%s6984_s7 + $0x350] ss:$28 sps:$4 sm:$0xff]  }
 0x320   :  { %v2125_v0 = vpop.f32.mrf.mxu0  ;;  %v2166_v1 = vpop.f32.mrf.mxu1 }
 0x321   :  { %v2126_v2 = vadd.f32 %v2125_v0, %v2030_v43  ;;  %v2167_v3 = vadd.f32 %v2166_v1, %v2038_v62  ;;  %v5162_v43 = vld [vmem:[%s6984_s7 + $0x31c] ss:$28 sps:$4 sm:$0xff]   ;;  %v5168_v0 = vld [vmem:[%s6984_s7 + $0x2e4] ss:$28 sps:$4 sm:$0xff]  }
 0x322   :  { %v2127_v4 = vpop.f32.mrf.mxu0  ;;  %v2168_v5 = vpop.f32.mrf.mxu1  ;;  %v5165_v62 = vld [vmem:[%s6984_s7 + $0x69c] ss:$28 sps:$4 sm:$0xff]   ;;  %v5171_v1 = vld [vmem:[%s6984_s7 + $0x664] ss:$28 sps:$4 sm:$0xff]  }
 0x323   :  { %v2128_v6 = vadd.f32 %v2127_v4, %v2034_v24  ;;  %v2169_v7 = vadd.f32 %v2168_v5, %v2042_v63  ;;  %v2173_v8 = vmax.f32 %v2126_v2, 0.0  ;;  %v2175_v10 = vmax.f32 %v2167_v3, 0.0  ;;  %v5160_v24 = vld [vmem:[%s6984_s7 + $0x318] ss:$28 sps:$4 sm:$0xff]   ;;  %v5166_v2 = vld [vmem:[%s6984_s7 + $0x2e0] ss:$28 sps:$4 sm:$0xff]  }
 0x324   :  { %v2129_v11 = vpop.f32.mrf.mxu0  ;;  %v2170_v12 = vpop.f32.mrf.mxu1  ;;  %v5163_v63 = vld [vmem:[%s6984_s7 + $0x698] ss:$28 sps:$4 sm:$0xff]   ;;  %v5169_v3 = vld [vmem:[%s6984_s7 + $0x660] ss:$28 sps:$4 sm:$0xff]   ;;  %v5174_v4 = vld [vmem:[%s6984_s7 + $0x2ac] ss:$28 sps:$4 sm:$0xff]  }
 0x325   :  { %v2174_v13 = vmax.f32 %v2128_v6, 0.0  ;;  %v2176_v14 = vmax.f32 %v2169_v7, 0.0  ;;  %v6459_v21 = vpack.c.bf16 %v2173_v8, %v2173_v8  ;;  %v6461_v22 = vpack.c.bf16 %v2175_v10, %v2175_v10  ;;  %v5177_v5 = vld [vmem:[%s6984_s7 + $0x62c] ss:$28 sps:$4 sm:$0xff]   ;;  %v5180_v8 = vld [vmem:[%s6984_s7 + $0x274] ss:$28 sps:$4 sm:$0xff]  }
 0x326   :  { %v2130_v15 = vpop.f32.mrf.mxu0  ;;  %v2171_v16 = vpop.f32.mrf.mxu1  ;;  %v5172_v6 = vld [vmem:[%s6984_s7 + $0x2a8] ss:$28 sps:$4 sm:$0xff]   ;;  %v5183_v10 = vld [vmem:[%s6984_s7 + $0x5f4] ss:$28 sps:$4 sm:$0xff]  }
 0x327   :  { %v6449_v17 = vpack.c.bf16 %v2174_v13, %v2174_v13  ;;  %v6451_v18 = vpack.c.bf16 %v2176_v14, %v2176_v14  ;;  %v5175_v7 = vld [vmem:[%s6984_s7 + $0x628] ss:$28 sps:$4 sm:$0xff]   ;;  %v5178_v11 = vld [vmem:[%s6984_s7 + $0x270] ss:$28 sps:$4 sm:$0xff]   ;;  %v5186_v13 = vld [vmem:[%s6984_s7 + $0x23c] ss:$28 sps:$4 sm:$0xff]  }
 0x328   :  { %v5181_v12 = vld [vmem:[%s6984_s7 + $0x5f0] ss:$28 sps:$4 sm:$0xff]   ;;  %v5189_v14 = vld [vmem:[%s6984_s7 + $0x5bc] ss:$28 sps:$4 sm:$0xff]  }
 0x329   :  { %3658 = vmatprep.mubr.bf16.mxu0 %v6449_v17  ;;  %3699 = vmatprep.mubr.bf16.mxu1 %v6451_v18  ;;  %v5184_v15 = vld [vmem:[%s6984_s7 + $0x238] ss:$28 sps:$4 sm:$0xff]  }
 0x32a   :  { %3659 = vmatmul.mubr.bf16.vlgmr.msra.gmra.mxu0 %v6459_v21  ;;  %3700 = vmatmul.mubr.bf16.vlgmr.msra.gmra.mxu1 %v6461_v22  ;;  %v5187_v16 = vld [vmem:[%s6984_s7 + $0x5b8] ss:$28 sps:$4 sm:$0xff]  }
 0x32b   :  { %3709 = vmatpush1.bf16.msra.mxu0 %v5106_v19  ;;  %3750 = vmatpush1.bf16.msra.mxu1 %v5109_v20  ;;  %v5192_v19 = vld [vmem:[%s6984_s7 + $0x204] ss:$28 sps:$4 sm:$0xff]  }
 0x32c   :  { %3740 = vmatprep.mubr.bf16.mxu0 %v6449_v17  ;;  %3781 = vmatprep.mubr.bf16.mxu1 %v6451_v18  ;;  %v5195_v20 = vld [vmem:[%s6984_s7 + $0x584] ss:$28 sps:$4 sm:$0xff]  }
 0x32d   :  { %3710 = vmatprep.subr.bf16.mxu0 %v5114_v23  ;;  %3751 = vmatprep.subr.bf16.mxu1 %v5117_v25  ;;  %v5190_v23 = vld [vmem:[%s6984_s7 + $0x200] ss:$28 sps:$4 sm:$0xff]  }
 0x32e   :  { %v5193_v25 = vld [vmem:[%s6984_s7 + $0x580] ss:$28 sps:$4 sm:$0xff]  }
 0x32f   :  { %3711 = vmatpush1.bf16.msra.mxu0 %v5112_v27  ;;  %3752 = vmatpush1.bf16.msra.mxu1 %v5115_v28  ;;  %v5198_v27 = vld [vmem:[%s6984_s7 + $0x1cc] ss:$28 sps:$4 sm:$0xff]  }
 0x330   :  { %3712 = vmatprep.subr.bf16.mxu0 %v5120_v29  ;;  %3753 = vmatprep.subr.bf16.mxu1 %v5123_v35  ;;  %v5201_v28 = vld [vmem:[%s6984_s7 + $0x54c] ss:$28 sps:$4 sm:$0xff]  }
 0x331   :  { %v5196_v29 = vld [vmem:[%s6984_s7 + $0x1c8] ss:$28 sps:$4 sm:$0xff]  }
 0x332   :  { %v5199_v35 = vld [vmem:[%s6984_s7 + $0x548] ss:$28 sps:$4 sm:$0xff]  }
 0x333   :  { %3713 = vmatpush1.bf16.msra.mxu0 %v5118_v30  ;;  %3754 = vmatpush1.bf16.msra.mxu1 %v5121_v31  ;;  %v5204_v30 = vld [vmem:[%s6984_s7 + $0x19c] ss:$28 sps:$4 sm:$0xff]  }
 0x334   :  { %3714 = vmatprep.subr.bf16.mxu0 %v5126_v32  ;;  %3755 = vmatprep.subr.bf16.mxu1 %v5129_v33  ;;  %v5207_v31 = vld [vmem:[%s6984_s7 + $0x51c] ss:$28 sps:$4 sm:$0xff]  }
 0x335   :  { %v5202_v32 = vld [vmem:[%s6984_s7 + $0x198] ss:$28 sps:$4 sm:$0xff]  }
 0x336   :  { %v5205_v33 = vld [vmem:[%s6984_s7 + $0x518] ss:$28 sps:$4 sm:$0xff]  }
 0x337   :  { %3715 = vmatpush1.bf16.msra.mxu0 %v5124_v36  ;;  %3756 = vmatpush1.bf16.msra.mxu1 %v5127_v39  ;;  %v5210_v36 = vld [vmem:[%s6984_s7 + $0x164] ss:$28 sps:$4 sm:$0xff]  }
 0x338   :  { %3716 = vmatprep.subr.bf16.mxu0 %v5132_v40  ;;  %3757 = vmatprep.subr.bf16.mxu1 %v5135_v41  ;;  %v5213_v39 = vld [vmem:[%s6984_s7 + $0x4e4] ss:$28 sps:$4 sm:$0xff]  }
 0x339   :  { %v5208_v40 = vld [vmem:[%s6984_s7 + $0x160] ss:$28 sps:$4 sm:$0xff]  }
 0x33a   :  { %v5211_v41 = vld [vmem:[%s6984_s7 + $0x4e0] ss:$28 sps:$4 sm:$0xff]  }
 0x33b   :  { %3717 = vmatpush1.bf16.msra.mxu0 %v5130_v42  ;;  %3758 = vmatpush1.bf16.msra.mxu1 %v5133_v44  ;;  %v5216_v42 = vld [vmem:[%s6984_s7 + $0x12c] ss:$28 sps:$4 sm:$0xff]  }
 0x33c   :  { %3718 = vmatprep.subr.bf16.mxu0 %v5138_v45  ;;  %3759 = vmatprep.subr.bf16.mxu1 %v5141_v47  ;;  %v5219_v44 = vld [vmem:[%s6984_s7 + $0x4ac] ss:$28 sps:$4 sm:$0xff]  }
 0x33d   :  { %v5214_v45 = vld [vmem:[%s6984_s7 + $0x128] ss:$28 sps:$4 sm:$0xff]  }
 0x33e   :  { %v5217_v47 = vld [vmem:[%s6984_s7 + $0x4a8] ss:$28 sps:$4 sm:$0xff]  }
 0x33f   :  { %3719 = vmatpush1.bf16.msra.mxu0 %v5136_v48  ;;  %3760 = vmatpush1.bf16.msra.mxu1 %v5139_v49  ;;  %v5222_v48 = vld [vmem:[%s6984_s7 + $0xf4] ss:$28 sps:$4 sm:$0xff]  }
 0x340   :  { %3720 = vmatprep.subr.bf16.mxu0 %v5144_v50  ;;  %3761 = vmatprep.subr.bf16.mxu1 %v5147_v51  ;;  %v5225_v49 = vld [vmem:[%s6984_s7 + $0x474] ss:$28 sps:$4 sm:$0xff]  }
 0x341   :  { %v5220_v50 = vld [vmem:[%s6984_s7 + $0xf0] ss:$28 sps:$4 sm:$0xff]  }
 0x342   :  { %v5223_v51 = vld [vmem:[%s6984_s7 + $0x470] ss:$28 sps:$4 sm:$0xff]  }
 0x343   :  { %3721 = vmatpush1.bf16.msra.mxu0 %v5142_v53  ;;  %3762 = vmatpush1.bf16.msra.mxu1 %v5145_v54  ;;  %v5228_v53 = vld [vmem:[%s6984_s7 + $0xbc] ss:$28 sps:$4 sm:$0xff]  }
 0x344   :  { %3722 = vmatprep.subr.bf16.mxu0 %v5150_v9  ;;  %3763 = vmatprep.subr.bf16.mxu1 %v5153_v55  ;;  %v5231_v54 = vld [vmem:[%s6984_s7 + $0x43c] ss:$28 sps:$4 sm:$0xff]  }
 0x345   :  { %v5226_v9 = vld [vmem:[%s6984_s7 + $0xb8] ss:$28 sps:$4 sm:$0xff]  }
 0x346   :  { %v5229_v55 = vld [vmem:[%s6984_s7 + $0x438] ss:$28 sps:$4 sm:$0xff]  }
 0x347   :  { %3723 = vmatpush1.bf16.msra.mxu0 %v5148_v56  ;;  %3764 = vmatpush1.bf16.msra.mxu1 %v5151_v57  ;;  %v5234_v56 = vld [vmem:[%s6984_s7 + $0x84] ss:$28 sps:$4 sm:$0xff]  }
 0x348   :  { %3724 = vmatprep.subr.bf16.mxu0 %v5156_v26  ;;  %3765 = vmatprep.subr.bf16.mxu1 %v5159_v58  ;;  %v5237_v57 = vld [vmem:[%s6984_s7 + $0x404] ss:$28 sps:$4 sm:$0xff]  }
 0x349   :  { %v5232_v26 = vld [vmem:[%s6984_s7 + $0x80] ss:$28 sps:$4 sm:$0xff]  }
 0x34a   :  { %v5235_v58 = vld [vmem:[%s6984_s7 + $0x400] ss:$28 sps:$4 sm:$0xff]  }
 0x34b   :  { %3725 = vmatpush2.bf16.msra.mxu0 %v5154_v59  ;;  %3766 = vmatpush2.bf16.msra.mxu1 %v5157_v38  ;;  %v5240_v59 = vld [vmem:[%s6984_s7 + $0x4c] ss:$28 sps:$4 sm:$0xff]  }
 0x34c   :  { %3726 = vmatprep.subr.bf16.mxu0 %v5162_v43  ;;  %3767 = vmatprep.subr.bf16.mxu1 %v5165_v62  ;;  %v5243_v38 = vld [vmem:[%s6984_s7 + $0x3cc] ss:$28 sps:$4 sm:$0xff]  }
 0x34d   :  { %v5238_v43 = vld [vmem:[%s6984_s7 + $0x48] ss:$28 sps:$4 sm:$0xff]  }
 0x34e   :  { %v5241_v62 = vld [vmem:[%s6984_s7 + $0x3c8] ss:$28 sps:$4 sm:$0xff]  }
 0x34f   :  { %3727 = vmatpush2.bf16.msra.mxu0 %v5160_v24  ;;  %3768 = vmatpush2.bf16.msra.mxu1 %v5163_v63  ;;  %v5246_v24 = vld [vmem:[%s6984_s7 + $0x14] ss:$28 sps:$4 sm:$0xff]  }
 0x350   :  { %3728 = vmatprep.subr.bf16.mxu0 %v5168_v0  ;;  %3769 = vmatprep.subr.bf16.mxu1 %v5171_v1  ;;  %v5249_v63 = vld [vmem:[%s6984_s7 + $0x394] ss:$28 sps:$4 sm:$0xff]  }
 0x351   :  { %v5244_v0 = vld [vmem:[%s6984_s7 + $0x10] ss:$28 sps:$4 sm:$0xff]  }
 0x352   :  { %v5247_v1 = vld [vmem:[%s6984_s7 + $0x390] ss:$28 sps:$4 sm:$0xff]  }
 0x353   :  { %3729 = vmatpush2.bf16.msra.mxu0 %v5166_v2  ;;  %3770 = vmatpush2.bf16.msra.mxu1 %v5169_v3  ;;  %v5252_v2 = vld [vmem:[%s6984_s7 + $0x35c] ss:$28 sps:$4 sm:$0xff]  }
 0x354   :  { %3730 = vmatprep.subr.bf16.mxu0 %v5174_v4  ;;  %3771 = vmatprep.subr.bf16.mxu1 %v5177_v5  ;;  %v5255_v3 = vld [vmem:[%s6984_s7 + $0x6dc] ss:$28 sps:$4 sm:$0xff]  }
 0x355   :  { %v5250_v4 = vld [vmem:[%s6984_s7 + $0x358] ss:$28 sps:$4 sm:$0xff]  }
 0x356   :  { %v5253_v5 = vld [vmem:[%s6984_s7 + $0x6d8] ss:$28 sps:$4 sm:$0xff]  }
 0x357   :  { %3731 = vmatpush2.bf16.msra.mxu0 %v5172_v6  ;;  %3772 = vmatpush2.bf16.msra.mxu1 %v5175_v7  ;;  %v5258_v6 = vld [vmem:[%s6984_s7 + $0x324] ss:$28 sps:$4 sm:$0xff]  }
 0x358   :  { %3732 = vmatprep.subr.bf16.mxu0 %v5180_v8  ;;  %3773 = vmatprep.subr.bf16.mxu1 %v5183_v10  ;;  %v5261_v7 = vld [vmem:[%s6984_s7 + $0x6a4] ss:$28 sps:$4 sm:$0xff]  }
 0x359   :  { %v5256_v8 = vld [vmem:[%s6984_s7 + $0x320] ss:$28 sps:$4 sm:$0xff]  }
 0x35a   :  { %v5259_v10 = vld [vmem:[%s6984_s7 + $0x6a0] ss:$28 sps:$4 sm:$0xff]  }
 0x35b   :  { %3733 = vmatpush2.bf16.msra.mxu0 %v5178_v11  ;;  %3774 = vmatpush2.bf16.msra.mxu1 %v5181_v12  ;;  %v5264_v11 = vld [vmem:[%s6984_s7 + $0x2ec] ss:$28 sps:$4 sm:$0xff]  }
 0x35c   :  { %3734 = vmatprep.subr.bf16.mxu0 %v5186_v13  ;;  %3775 = vmatprep.subr.bf16.mxu1 %v5189_v14  ;;  %v5267_v12 = vld [vmem:[%s6984_s7 + $0x66c] ss:$28 sps:$4 sm:$0xff]  }
 0x35d   :  { %v5262_v13 = vld [vmem:[%s6984_s7 + $0x2e8] ss:$28 sps:$4 sm:$0xff]  }
 0x35e   :  { %v5265_v14 = vld [vmem:[%s6984_s7 + $0x668] ss:$28 sps:$4 sm:$0xff]  }
 0x35f   :  { %3735 = vmatpush2.bf16.msra.mxu0 %v5184_v15  ;;  %3776 = vmatpush2.bf16.msra.mxu1 %v5187_v16  ;;  %v5270_v15 = vld [vmem:[%s6984_s7 + $0x2b4] ss:$28 sps:$4 sm:$0xff]  }
 0x360   :  { %3736 = vmatprep.subr.bf16.mxu0 %v5192_v19  ;;  %3777 = vmatprep.subr.bf16.mxu1 %v5195_v20  ;;  %v5273_v16 = vld [vmem:[%s6984_s7 + $0x634] ss:$28 sps:$4 sm:$0xff]  }
 0x361   :  { %v5268_v19 = vld [vmem:[%s6984_s7 + $0x2b0] ss:$28 sps:$4 sm:$0xff]  }
 0x362   :  { %v5271_v20 = vld [vmem:[%s6984_s7 + $0x630] ss:$28 sps:$4 sm:$0xff]  }
 0x363   :  { %3737 = vmatpush2.bf16.msra.mxu0 %v5190_v23  ;;  %3778 = vmatpush2.bf16.msra.mxu1 %v5193_v25  ;;  %v5276_v23 = vld [vmem:[%s6984_s7 + $0x27c] ss:$28 sps:$4 sm:$0xff]  }
 0x364   :  { %3738 = vmatprep.subr.bf16.mxu0 %v5198_v27  ;;  %3779 = vmatprep.subr.bf16.mxu1 %v5201_v28  ;;  %v5279_v25 = vld [vmem:[%s6984_s7 + $0x5fc] ss:$28 sps:$4 sm:$0xff]  }
 0x365   :  { %v5274_v27 = vld [vmem:[%s6984_s7 + $0x278] ss:$28 sps:$4 sm:$0xff]  }
 0x366   :  { %v5277_v28 = vld [vmem:[%s6984_s7 + $0x5f8] ss:$28 sps:$4 sm:$0xff]  }
 0x367   :  { %3739 = vmatpush2.bf16.msra.mxu0 %v5196_v29  ;;  %3780 = vmatpush2.bf16.msra.mxu1 %v5199_v35  ;;  %v5282_v29 = vld [vmem:[%s6984_s7 + $0x244] ss:$28 sps:$4 sm:$0xff]  }
 0x368   :  { %3790 = vmatprep.subr.bf16.mxu0 %v5204_v30  ;;  %3831 = vmatprep.subr.bf16.mxu1 %v5207_v31  ;;  %v5285_v35 = vld [vmem:[%s6984_s7 + $0x5c4] ss:$28 sps:$4 sm:$0xff]  }
 0x369   :  { %v5280_v30 = vld [vmem:[%s6984_s7 + $0x240] ss:$28 sps:$4 sm:$0xff]  }
 0x36a   :  { %3741 = vmatmul.mubr.bf16.vlgmr.msra.gmra.mxu0 %v6459_v21  ;;  %3782 = vmatmul.mubr.bf16.vlgmr.msra.gmra.mxu1 %v6461_v22  ;;  %v5283_v31 = vld [vmem:[%s6984_s7 + $0x5c0] ss:$28 sps:$4 sm:$0xff]  }
 0x36b   :  { %3791 = vmatpush1.bf16.msra.mxu0 %v5202_v32  ;;  %3822 = vmatprep.mubr.bf16.mxu0 %v6449_v17  ;;  %v5288_v32 = vld [vmem:[%s6984_s7 + $0x20c] ss:$28 sps:$4 sm:$0xff]  }
 0x36c   :  { %3832 = vmatpush1.bf16.msra.mxu1 %v5205_v33  ;;  %3863 = vmatprep.mubr.bf16.mxu1 %v6451_v18  ;;  %v5291_v33 = vld [vmem:[%s6984_s7 + $0x58c] ss:$28 sps:$4 sm:$0xff]  }
 0x36d   :  { %3792 = vmatprep.subr.bf16.mxu0 %v5210_v36  ;;  %3833 = vmatprep.subr.bf16.mxu1 %v5213_v39  ;;  %v5286_v36 = vld [vmem:[%s6984_s7 + $0x208] ss:$28 sps:$4 sm:$0xff]  }
 0x36e   :  { %v5289_v39 = vld [vmem:[%s6984_s7 + $0x588] ss:$28 sps:$4 sm:$0xff]  }
 0x36f   :  { %3793 = vmatpush1.bf16.msra.mxu0 %v5208_v40  ;;  %v5294_v40 = vld [vmem:[%s6984_s7 + $0x1d4] ss:$28 sps:$4 sm:$0xff]  }
 0x370   :  { %3834 = vmatpush1.bf16.msra.mxu1 %v5211_v41  ;;  %3794 = vmatprep.subr.bf16.mxu0 %v5216_v42  ;;  %v5297_v41 = vld [vmem:[%s6984_s7 + $0x554] ss:$28 sps:$4 sm:$0xff]  }
 0x371   :  { %3835 = vmatprep.subr.bf16.mxu1 %v5219_v44  ;;  %v5292_v42 = vld [vmem:[%s6984_s7 + $0x1d0] ss:$28 sps:$4 sm:$0xff]  }
 0x372   :  { %v5295_v44 = vld [vmem:[%s6984_s7 + $0x550] ss:$28 sps:$4 sm:$0xff]  }
 0x373   :  { %3795 = vmatpush1.bf16.msra.mxu0 %v5214_v45  ;;  %v5298_v45 = vld [vmem:[%s6984_s7 + $0x360] ss:$28 sps:$4 sm:$0xff]  }
 0x374   :  { %3836 = vmatpush1.bf16.msra.mxu1 %v5217_v47  ;;  %3796 = vmatprep.subr.bf16.mxu0 %v5222_v48  ;;  %v5299_v47 = vld [vmem:[%s6984_s7 + $0x6e0] ss:$28 sps:$4 sm:$0xff]  }
 0x375   :  { %3837 = vmatprep.subr.bf16.mxu1 %v5225_v49  ;;  %v5300_v48 = vld [vmem:[%s6984_s7 + $0x1a0] ss:$28 sps:$4 sm:$0xff]  }
 0x376   :  { %v5301_v49 = vld [vmem:[%s6984_s7 + $0x520] ss:$28 sps:$4 sm:$0xff]  }
 0x377   :  { %3797 = vmatpush1.bf16.msra.mxu0 %v5220_v50  ;;  %v5302_v50 = vld [vmem:[%s6984_s7 + $0x328] ss:$28 sps:$4 sm:$0xff]  }
 0x378   :  { %3838 = vmatpush1.bf16.msra.mxu1 %v5223_v51  ;;  %3798 = vmatprep.subr.bf16.mxu0 %v5228_v53  ;;  %v5303_v51 = vld [vmem:[%s6984_s7 + $0x6a8] ss:$28 sps:$4 sm:$0xff]  }
 0x379   :  { %3839 = vmatprep.subr.bf16.mxu1 %v5231_v54  ;;  %v5304_v53 = vld [vmem:[%s6984_s7 + $0x168] ss:$28 sps:$4 sm:$0xff]  }
 0x37a   :  { %v5305_v54 = vld [vmem:[%s6984_s7 + $0x4e8] ss:$28 sps:$4 sm:$0xff]  }
 0x37b   :  { %3799 = vmatpush1.bf16.msra.mxu0 %v5226_v9  ;;  %v5306_v9 = vld [vmem:[%s6984_s7 + $0x2f0] ss:$28 sps:$4 sm:$0xff]  }
 0x37c   :  { %3840 = vmatpush1.bf16.msra.mxu1 %v5229_v55  ;;  %3800 = vmatprep.subr.bf16.mxu0 %v5234_v56  ;;  %v5307_v55 = vld [vmem:[%s6984_s7 + $0x670] ss:$28 sps:$4 sm:$0xff]  }
 0x37d   :  { %3841 = vmatprep.subr.bf16.mxu1 %v5237_v57  ;;  %v5309_v56 = vld [vmem:[%s6984_s7 + $0x4b0] ss:$28 sps:$4 sm:$0xff]   ;;  %v5311_v57 = vld [vmem:[%s6984_s7 + $0x638] ss:$28 sps:$4 sm:$0xff]  }
 0x37f   :  { %3801 = vmatpush1.bf16.msra.mxu0 %v5232_v26  ;;  %v5312_v26 = vld [vmem:[%s6984_s7 + $0xf8] ss:$28 sps:$4 sm:$0xff]  }
 0x380   :  { %3842 = vmatpush1.bf16.msra.mxu1 %v5235_v58  ;;  %3802 = vmatprep.subr.bf16.mxu0 %v5240_v59  ;;  %v5313_v58 = vld [vmem:[%s6984_s7 + $0x478] ss:$28 sps:$4 sm:$0xff]   ;;  %v5314_v59 = vld [vmem:[%s6984_s7 + $0x280] ss:$28 sps:$4 sm:$0xff]  }
 0x381   :  { %3843 = vmatprep.subr.bf16.mxu1 %v5243_v38  ;;  %v5315_v38 = vld [vmem:[%s6984_s7 + $0x600] ss:$28 sps:$4 sm:$0xff]  }
 0x383   :  { %3803 = vmatpush1.bf16.msra.mxu0 %v5238_v43  ;;  %v5316_v43 = vld [vmem:[%s6984_s7 + $0xc0] ss:$28 sps:$4 sm:$0xff]  }
 0x384   :  { %3844 = vmatpush1.bf16.msra.mxu1 %v5241_v62  ;;  %3804 = vmatprep.subr.bf16.mxu0 %v5246_v24  ;;  %v5317_v62 = vld [vmem:[%s6984_s7 + $0x440] ss:$28 sps:$4 sm:$0xff]   ;;  %v5318_v24 = vld [vmem:[%s6984_s7 + $0x248] ss:$28 sps:$4 sm:$0xff]  }
 0x385   :  { %3845 = vmatprep.subr.bf16.mxu1 %v5249_v63  ;;  %v5319_v63 = vld [vmem:[%s6984_s7 + $0x5c8] ss:$28 sps:$4 sm:$0xff]  }
 0x387   :  { %3805 = vmatpush1.bf16.msra.mxu0 %v5244_v0  ;;  %v5320_v0 = vld [vmem:[%s6984_s7 + $0x88] ss:$28 sps:$4 sm:$0xff]  }
 0x388   :  { %3846 = vmatpush1.bf16.msra.mxu1 %v5247_v1  ;;  %3806 = vmatprep.subr.bf16.mxu0 %v5252_v2  ;;  %v5321_v1 = vld [vmem:[%s6984_s7 + $0x408] ss:$28 sps:$4 sm:$0xff]   ;;  %v5322_v2 = vld [vmem:[%s6984_s7 + $0x210] ss:$28 sps:$4 sm:$0xff]  }
 0x389   :  { %3847 = vmatprep.subr.bf16.mxu1 %v5255_v3  ;;  %v5323_v3 = vld [vmem:[%s6984_s7 + $0x590] ss:$28 sps:$4 sm:$0xff]  }
 0x38b   :  { %3807 = vmatpush2.bf16.msra.mxu0 %v5250_v4  ;;  %v5324_v4 = vld [vmem:[%s6984_s7 + $0x50] ss:$28 sps:$4 sm:$0xff]  }
 0x38c   :  { %3848 = vmatpush2.bf16.msra.mxu1 %v5253_v5  ;;  %3808 = vmatprep.subr.bf16.mxu0 %v5258_v6  ;;  %v5325_v5 = vld [vmem:[%s6984_s7 + $0x3d0] ss:$28 sps:$4 sm:$0xff]   ;;  %v5326_v6 = vld [vmem:[%s6984_s7 + $0x1d8] ss:$28 sps:$4 sm:$0xff]  }
 0x38d   :  { %3849 = vmatprep.subr.bf16.mxu1 %v5261_v7  ;;  %v5327_v7 = vld [vmem:[%s6984_s7 + $0x558] ss:$28 sps:$4 sm:$0xff]  }
 0x38f   :  { %3809 = vmatpush2.bf16.msra.mxu0 %v5256_v8  ;;  %v5328_v8 = vld [vmem:[%s6984_s7 + $0x18] ss:$28 sps:$4 sm:$0xff]  }
 0x390   :  { %3850 = vmatpush2.bf16.msra.mxu1 %v5259_v10  ;;  %3810 = vmatprep.subr.bf16.mxu0 %v5264_v11  ;;  %v5329_v10 = vld [vmem:[%s6984_s7 + $0x398] ss:$28 sps:$4 sm:$0xff]   ;;  %v6950_v11 = vld [vmem:[%s6985_s8] sm:$0x7f] }
 0x391   :  { %3851 = vmatprep.subr.bf16.mxu1 %v5267_v12  ;;  %v2442_v12 = vrot.slane %v6950_v11, %v6197_v34 }
 0x393   :  { %3811 = vmatpush2.bf16.msra.mxu0 %v5262_v13  ;;  %v2446_v13 = vrot.slane %v6950_v11, %v6203_v37 }
 0x394   :  { %3852 = vmatpush2.bf16.msra.mxu1 %v5265_v14  ;;  %3812 = vmatprep.subr.bf16.mxu0 %v5270_v15 }
 0x395   :  { %3853 = vmatprep.subr.bf16.mxu1 %v5273_v16 }
 0x397   :  { %3813 = vmatpush2.bf16.msra.mxu0 %v5268_v19 }
 0x398   :  { %3854 = vmatpush2.bf16.msra.mxu1 %v5271_v20  ;;  %3814 = vmatprep.subr.bf16.mxu0 %v5276_v23 }
 0x399   :  { %3855 = vmatprep.subr.bf16.mxu1 %v5279_v25 }
 0x39b   :  { %3815 = vmatpush2.bf16.msra.mxu0 %v5274_v27 }
 0x39c   :  { %3856 = vmatpush2.bf16.msra.mxu1 %v5277_v28  ;;  %3816 = vmatprep.subr.bf16.mxu0 %v5282_v29 }
 0x39d   :  { %3857 = vmatprep.subr.bf16.mxu1 %v5285_v35 }
 0x39f   :  { %3817 = vmatpush2.bf16.msra.mxu0 %v5280_v30 }
 0x3a0   :  { %3858 = vmatpush2.bf16.msra.mxu1 %v5283_v31  ;;  %3818 = vmatprep.subr.bf16.mxu0 %v5288_v32 }
 0x3a1   :  { %3859 = vmatprep.subr.bf16.mxu1 %v5291_v33 }
 0x3a3   :  { %3819 = vmatpush2.bf16.msra.mxu0 %v5286_v36 }
 0x3a4   :  { %3860 = vmatpush2.bf16.msra.mxu1 %v5289_v39  ;;  %3820 = vmatprep.subr.bf16.mxu0 %v5294_v40 }
 0x3a5   :  { %3861 = vmatprep.subr.bf16.mxu1 %v5297_v41 }
 0x3a7   :  { %3821 = vmatpush2.bf16.msra.mxu0 %v5292_v42 }
 0x3a8   :  { %3862 = vmatpush2.bf16.msra.mxu1 %v5295_v44  ;;  %4611 = vmatprep.subr.bf16.mxu0 %v5298_v45  ;;  %v2450_v44 = vrot.slane %v6950_v11, %v6209_v60  ;;  %v2454_v45 = vrot.slane %v6950_v11, %v6212_v61 }
 0x3a9   :  { %4633 = vmatprep.subr.bf16.mxu1 %v5299_v47 }
 0x3aa   :  { %3823 = vmatmul.mubr.bf16.vlgmr.msra.gmra.mxu0 %v6459_v21 }
 0x3ab   :  { %3864 = vmatmul.mubr.bf16.vlgmr.msra.gmra.mxu1 %v6461_v22  ;;  %4612 = vmatpush3.bf16.msra.mxu0 %v5300_v48 }
 0x3ac   :  { %3904 = vmatprep.mubr.bf16.mxu0 %v6449_v17  ;;  %4634 = vmatpush3.bf16.msra.mxu1 %v5301_v49  ;;  %v5308_v17 = vld [vmem:[%s6984_s7 + $0x130] ss:$28 sps:$4 sm:$0xff]  }
 0x3ad   :  { %3944 = vmatprep.mubr.bf16.mxu1 %v6451_v18  ;;  %4613 = vmatprep.subr.bf16.mxu0 %v5302_v50  ;;  %v5310_v18 = vld [vmem:[%s6984_s7 + $0x2b8] ss:$28 sps:$4 sm:$0xff]  }
 0x3ae   :  { %4635 = vmatprep.subr.bf16.mxu1 %v5303_v51 }
 0x3af   :  { %4614 = vmatpush3.bf16.msra.mxu0 %v5304_v53 }
 0x3b0   :  { %4636 = vmatpush3.bf16.msra.mxu1 %v5305_v54  ;;  %4615 = vmatprep.subr.bf16.mxu0 %v5306_v9 }
 0x3b1   :  { %4637 = vmatprep.subr.bf16.mxu1 %v5307_v55 }
 0x3b3   :  { %4616 = vmatpush3.bf16.msra.mxu0 %v5308_v17 }
 0x3b4   :  { %4638 = vmatpush3.bf16.msra.mxu1 %v5309_v56  ;;  %4617 = vmatprep.subr.bf16.mxu0 %v5310_v18 }
 0x3b5   :  { %4639 = vmatprep.subr.bf16.mxu1 %v5311_v57 }
 0x3b7   :  { %4618 = vmatpush3.bf16.msra.mxu0 %v5312_v26 }
 0x3b8   :  { %4640 = vmatpush3.bf16.msra.mxu1 %v5313_v58  ;;  %4619 = vmatprep.subr.bf16.mxu0 %v5314_v59 }
 0x3b9   :  { %4641 = vmatprep.subr.bf16.mxu1 %v5315_v38 }
 0x3bb   :  { %4620 = vmatpush3.bf16.msra.mxu0 %v5316_v43 }
 0x3bc   :  { %4642 = vmatpush3.bf16.msra.mxu1 %v5317_v62  ;;  %4621 = vmatprep.subr.bf16.mxu0 %v5318_v24 }
 0x3bd   :  { %4643 = vmatprep.subr.bf16.mxu1 %v5319_v63 }
 0x3bf   :  { %4622 = vmatpush3.bf16.msra.mxu0 %v5320_v0 }
 0x3c0   :  { %4644 = vmatpush3.bf16.msra.mxu1 %v5321_v1  ;;  %4623 = vmatprep.subr.bf16.mxu0 %v5322_v2 }
 0x3c1   :  { %4645 = vmatprep.subr.bf16.mxu1 %v5323_v3 }
 0x3c3   :  { %4624 = vmatpush3.bf16.msra.mxu0 %v5324_v4 }
 0x3c4   :  { %4646 = vmatpush3.bf16.msra.mxu1 %v5325_v5  ;;  %4625 = vmatprep.subr.bf16.mxu0 %v5326_v6 }
 0x3c5   :  { %4647 = vmatprep.subr.bf16.mxu1 %v5327_v7 }
 0x3c7   :  { %4626 = vmatpush3.bf16.msra.mxu0 %v5328_v8 }
 0x3c8   :  { %4648 = vmatpush3.bf16.msra.mxu1 %v5329_v10 }
 0x3ca   :  { %3905 = vmatmul.mubr.bf16.vlgmr.msra.gmra.mxu0 %v6459_v21 }
 0x3cb   :  { %3945 = vmatmul.mubr.bf16.vlgmr.msra.gmra.mxu1 %v6461_v22 }
 0x3ea   :  { %v3660_v14 = vpop.f32.mrf.mxu0  ;;  %v3701_v15 = vpop.f32.mrf.mxu1 }
 0x3eb   :  { %v3661_v16 = vadd.f32 %v3660_v14, %v2442_v12 }
 0x3ec   :  { %v3662_v19 = vpop.f32.mrf.mxu0  ;;  %v3703_v20 = vpop.f32.mrf.mxu1 }
 0x3ed   :  { %v3702_v23 = vadd.f32 %v3701_v15, %v3661_v16  ;;  %v3663_v21 = vadd.f32 %v3662_v19, %v2446_v13 }
 0x3ee   :  { %v3664_v25 = vpop.f32.mrf.mxu0  ;;  %v3705_v22 = vpop.f32.mrf.mxu1 }
 0x3ef   :  { %v3952_v27 = vsub.f32 0.0, %v3702_v23  ;;  %v3704_v28 = vadd.f32 %v3703_v20, %v3663_v21  ;;  %v2461_v23 = vsub.s32 5, %v5561_v46  ;;  %v2457_v21 = vsub.s32 4, %v5561_v46 }
 0x3f0   :  { %v3665_v29 = vpop.f32.mrf.mxu0  ;;  %v3706_v35 = vpop.f32.mrf.mxu1 }
 0x3f1   :  { %v3959_v30 = vmul.f32 1.442695, %v3952_v27  ;;  %v3953_v31 = vsub.f32 0.0, %v3704_v28  ;;  %v2462_v25 = vrot.slane %v6950_v11, %v2461_v23  ;;  %v2458_v22 = vrot.slane %v6950_v11, %v2457_v21 }
 0x3f3   :  { %5330 = vpow2.f32 %v3959_v30  ;;  %v3961_v34 = vmul.f32 1.442695, %v3953_v31 }
 0x3f5   :  { %5332 = vpow2.f32 %v3961_v34  ;;  %v2465_v34 = vsub.s32 6, %v5561_v46 }
 0x400   :  { %v5331_v32 = vpop.eup %5330 }
 0x401   :  { %v3973_v37 = vadd.f32 1.0, %v5331_v32 }
 0x402   :  { %v5333_v33 = vpop.eup %5332 }
 0x403   :  { %v3974_v36 = vadd.f32 1.0, %v5333_v33  ;;  %5334 = vrcp.f32 %v3973_v37 }
 0x405   :  { %5336 = vrcp.f32 %v3974_v36 }
 0x410   :  { %v5335_v39 = vpop.eup %5334 }
 0x412   :  { %v5337_v40 = vpop.eup %5336 }
 0x413   :  { %v3994_v41 = vcombine.low %v5335_v39, %v5337_v40  ;;  %v3995_v42 = vcombine.high %v5335_v39, %v5337_v40  ;;  %v2466_v39 = vrot.slane %v6950_v11, %v2465_v34 }
 0x415   :  { %v4004_v1 = vrot.slane %v3994_v41, %v5579_v52  ;;  %v4011_v2 = vrot.slane %v3995_v42, %v5579_v52 }
 0x42a   :  { %v3742_v47 = vpop.f32.mrf.mxu0  ;;  %v3783_v48 = vpop.f32.mrf.mxu1 }
 0x42b   :  { %v3743_v49 = vadd.f32 %v3742_v47, %v2450_v44 }
 0x42c   :  { %v3744_v50 = vpop.f32.mrf.mxu0  ;;  %v3785_v51 = vpop.f32.mrf.mxu1 }
 0x42d   :  { %v3784_v53 = vadd.f32 %v3783_v48, %v3743_v49  ;;  %v3745_v54 = vadd.f32 %v3744_v50, %v2454_v45 }
 0x42e   :  { %v3746_v9 = vpop.f32.mrf.mxu0  ;;  %v3787_v55 = vpop.f32.mrf.mxu1 }
 0x42f   :  { %v3954_v17 = vsub.f32 0.0, %v3784_v53  ;;  %v3786_v56 = vadd.f32 %v3785_v51, %v3745_v54 }
 0x430   :  { %v3747_v18 = vpop.f32.mrf.mxu0  ;;  %v3788_v57 = vpop.f32.mrf.mxu1 }
 0x431   :  { %v3963_v26 = vmul.f32 1.442695, %v3954_v17  ;;  %v3955_v58 = vsub.f32 0.0, %v3786_v56 }
 0x433   :  { %5338 = vpow2.f32 %v3963_v26  ;;  %v3965_v60 = vmul.f32 1.442695, %v3955_v58 }
 0x435   :  { %5340 = vpow2.f32 %v3965_v60 }
 0x440   :  { %v5339_v59 = vpop.eup %5338 }
 0x441   :  { %v3975_v61 = vadd.f32 1.0, %v5339_v59 }
 0x442   :  { %v5341_v38 = vpop.eup %5340 }
 0x443   :  { %v3976_v43 = vadd.f32 1.0, %v5341_v38  ;;  %5342 = vrcp.f32 %v3975_v61 }
 0x445   :  { %5344 = vrcp.f32 %v3976_v43 }
 0x450   :  { %v5343_v62 = vpop.eup %5342 }
 0x452   :  { %v5345_v24 = vpop.eup %5344 }
 0x453   :  { %v3996_v63 = vcombine.low %v5343_v62, %v5345_v24  ;;  %v3997_v0 = vcombine.high %v5343_v62, %v5345_v24 }
 0x455   :  { %v4018_v3 = vrot.slane %v3996_v63, %v5579_v52  ;;  %v4025_v4 = vrot.slane %v3997_v0, %v5579_v52 }
 0x457   :  { %v4026_v5 = vcombine.low %v4004_v1, %v4018_v3  ;;  %v4027_v6 = vcombine.high %v4004_v1, %v4018_v3  ;;  %v4028_v7 = vcombine.low %v4011_v2, %v4025_v4  ;;  %v4029_v8 = vcombine.high %v4011_v2, %v4025_v4 }
 0x459   :  { %4073 = vst [vmem:[#allocation2] sm:$0xff] %v4026_v5  ;;  %4080 = vst [vmem:[#allocation2 + $0xe] sm:$0xff] %v4027_v6 }
 0x45a   :  { %4082 = vst [vmem:[#allocation2 + $0x1c] sm:$0xff] %v4028_v7  ;;  %4084 = vst [vmem:[#allocation2 + $0x2a] sm:$0xff] %v4029_v8 }
 0x46a   :  { %v3824_v10 = vpop.f32.mrf.mxu0 }
 0x46b   :  { %v3865_v12 = vpop.f32.mrf.mxu1  ;;  %v3825_v28 = vadd.f32 %v3824_v10, %v2458_v22 }
 0x46c   :  { %v3826_v13 = vpop.f32.mrf.mxu0 }
 0x46d   :  { %v3867_v14 = vpop.f32.mrf.mxu1  ;;  %v3827_v27 = vadd.f32 %v3826_v13, %v2462_v25  ;;  %v3866_v35 = vadd.f32 %v3865_v12, %v3825_v28 }
 0x46e   :  { %v3828_v15 = vpop.f32.mrf.mxu0 }
 0x46f   :  { %v3869_v16 = vpop.f32.mrf.mxu1  ;;  %v3868_v29 = vadd.f32 %v3867_v14, %v3827_v27  ;;  %v3956_v31 = vsub.f32 0.0, %v3866_v35 }
 0x470   :  { %v3829_v19 = vpop.f32.mrf.mxu0 }
 0x471   :  { %v3870_v20 = vpop.f32.mrf.mxu1  ;;  %v3957_v30 = vsub.f32 0.0, %v3868_v29  ;;  %v3967_v33 = vmul.f32 1.442695, %v3956_v31 }
 0x473   :  { %v3969_v32 = vmul.f32 1.442695, %v3957_v30 }
 0x475   :  { %5346 = vpow2.f32 %v3969_v32 }
 0x476   :  { %5348 = vpow2.f32 %v3967_v33 }
 0x482   :  { %v5347_v54 = vpop.eup %5346 }
 0x483   :  { %v5349_v9 = vpop.eup %5348  ;;  %v3978_v55 = vadd.f32 1.0, %v5347_v54 }
 0x484   :  { %v3977_v17 = vadd.f32 1.0, %v5349_v9 }
 0x48a   :  { %v4627_v37 = vpop.f32.mrf.mxu0 }
 0x48b   :  { %v4649_v36 = vpop.f32.mrf.mxu1 }
 0x48c   :  { %v4628_v40 = vpop.f32.mrf.mxu0 }
 0x48d   :  { %v4629_v41 = vadd.f32 %v4628_v40, %v4627_v37  ;;  %v4650_v42 = vpop.f32.mrf.mxu1 }
 0x48e   :  { %v4630_v44 = vpop.f32.mrf.mxu0  ;;  %v4651_v47 = vadd.f32 %v4650_v42, %v4649_v36 }
 0x48f   :  { %v3907_v45 = vadd.f32 %v4629_v41, %v2466_v39  ;;  %v4652_v48 = vpop.f32.mrf.mxu1 }
 0x490   :  { %v4631_v49 = vpop.f32.mrf.mxu0 }
 0x491   :  { %v3947_v50 = vadd.f32 %v4651_v47, %v3907_v45  ;;  %v4653_v51 = vpop.f32.mrf.mxu1 }
 0x493   :  { %v3958_v53 = vsub.f32 0.0, %v3947_v50 }
 0x495   :  { %v3971_v46 = vmul.f32 1.442695, %v3958_v53 }
 0x497   :  { %5350 = vpow2.f32 %v3971_v46 }
 0x498   :  { %5352 = vrcp.f32 %v3978_v55 }
 0x499   :  { %5354 = vrcp.f32 %v3977_v17 }
 0x4a4   :  { %v5351_v11 = vpop.eup %5350 }
 0x4a5   :  { %v3979_v56 = vadd.f32 1.0, %v5351_v11  ;;  %v5353_v18 = vpop.eup %5352 }
 0x4a6   :  { %v5355_v57 = vpop.eup %5354 }
 0x4a7   :  { %5356 = vrcp.f32 %v3979_v56  ;;  %v4030_v26 = vcombine.low %v5355_v57, %v5353_v18  ;;  %v4031_v58 = vcombine.high %v5355_v57, %v5353_v18 }
 0x4a9   :  { %v4039_v59 = vrot.slane %v4030_v26, %v5579_v52  ;;  %v4046_v43 = vrot.slane %v4031_v58, %v5579_v52 }
 0x4b4   :  { %v5357_v60 = vpop.eup %5356 }
 0x4b5   :  { %v4032_v61 = vcombine.high %v5357_v60, %v5357_v60  ;;  %v4053_v38 = vrot.slane %v5357_v60, %v5579_v52 }
 0x4b7   :  { %v4060_v62 = vrot.slane %v4032_v61, %v5579_v52  ;;  %v4061_v24 = vcombine.low %v4039_v59, %v4053_v38  ;;  %v4062_v63 = vcombine.high %v4039_v59, %v4053_v38 }
 0x4b9   :  { %v4063_v0 = vcombine.low %v4046_v43, %v4060_v62  ;;  %v4064_v1 = vcombine.high %v4046_v43, %v4060_v62  ;;  %4079 = vst.msk [vmem:[#allocation2 + $0x8] sm:$0x3f] %vm4078_vm6, %v4061_v24  ;;  %4081 = vst.msk [vmem:[#allocation2 + $0x16] sm:$0x3f] %vm4078_vm6, %v4062_v63 }
 0x4bb   :  { %4083 = vst.msk [vmem:[#allocation2 + $0x24] sm:$0x3f] %vm4078_vm6, %v4063_v0  ;;  %4085 = vst.msk [vmem:[#allocation2 + $0x32] sm:$0x3f] %vm4078_vm6, %v4064_v1 }
 0x4bc   :  { %4090 = vsyncadd [#allocation3], 672  ;;  %s5382_s7 = smov [#allocation2]  }
 0x4bd   :  { %s4091_s8 = sshll.u32 %s5382_s7, 4  ;;  %s4092_s8 = int_to_ptr.vmem [resolvable:$true] %s4091_s8 }
 0x4be   :  { %s5358_s2 = scalar_lea.vmem %s4092_s8, 224  ;;  %s5362_s3 = scalar_lea.vmem %s4092_s8, 896 }
 0x4bf   :  { %p5359_p0 = scmp.ne.s32.totalorder %s4092_s8, %s5358_s2  ;;  %p5363_p1 = scmp.lt.s32.totalorder %s4092_s8, %s4092_s8 }
 0x4c0   :  { %p5364_p2 = scmp.lt.s32.totalorder %s5362_s3, %s5358_s2 }
 0x4c2   :  { %p5365_p3 = por %p5364_p2, %p5363_p1 }
 0x4c4   :  { %p5366_p4 = pnand %p5365_p3, %p5359_p0 }
 0x4c6   :  { %5369 = shalt.err (!%p5366_p4)
}
 0x4c7   :  { %s5383_s4 = smov 224   ;;  %s5384_s26 = smov 14  }
 0x4c8   :  { %4097 = dma.vmem_to_hbm [thread:$0]  %s4092_s8, 224, %s6986_s9, [#allocation3], %s5383_s4, %s5383_s4, %s5384_s26  }
 0x4c9   :  { %5378 = dma.done.wait [#allocation3], 896  }
 0x4ca   :  { %5379 = vsyncadd [#allocation3], 4294966400 }
 0x4cb   :  { %4101 = vsyncpa [#allocation3], 1 }

</bundles_post_ra>
